<compile_context>
chip_gen: v7x
topology: tpu7x:2x2x1
jax: 0.10.0
libtpu: 0.0.40
codegen_flags: <defaults>
</compile_context>

<pallas_src>
import functools

import jax
import jax.numpy as jnp
import numpy as np
from jax.experimental import pallas as pl
from jax.experimental.pallas import tpu as pltpu

LN_EPS = 1e-5
NEG_INF = -1e30     # additive bias for padded text keys
NEG_BLOCK = -2e30   # additive bias for cross-(batch, head) score blocks


def _layer_norm(x, gamma, beta):
    mu = jnp.mean(x, axis=-1, keepdims=True)
    var = jnp.mean((x - mu) ** 2, axis=-1, keepdims=True)
    return (x - mu) * jax.lax.rsqrt(var + LN_EPS) * gamma + beta


def t2v_kernel(nhead, Lv,
               src_ref, pos_ref, bias_ref,
               wq_ref, bq_ref, wk_ref, bk_ref, wv_ref, bv_ref,
               wo_ref, bo_ref, w1_ref, b1_ref, w2_ref, b2_ref,
               g1_ref, be1_ref, g2_ref, be2_ref,
               o_ref):
    L, B, D = src_ref.shape
    Lt = L - Lv - 1
    hd = D // nhead
    Nq = Lv * B
    Nk = Lt * B
    scale = 1.0 / float(np.sqrt(hd))

    def linear(x, w_ref_, b_ref_):
        # Weights arrive pre-transposed (in, out): plain x @ W^T, no in-kernel transpose.
        return jnp.dot(x, w_ref_[...], preferred_element_type=jnp.float32) + b_ref_[...]

    # ---- whole-slab input build (no per-batch slices / concats) --------------------
    sv = src_ref[1:Lv + 1, :, :]                              # video tokens (Lv, B, D)
    st = src_ref[Lv + 1:, :, :]                               # text tokens  (Lt, B, D)
    q_in = (sv + pos_ref[1:Lv + 1, :, :]).reshape(Nq, D)      # rows ordered (l, b)
    k_in = (st + pos_ref[Lv + 1:, :, :]).reshape(Nk, D)       # rows ordered (t, b)
    v_in = st.reshape(Nk, D)
    resid = sv.reshape(Nq, D)

    # Pass-through rows of the output (global token + text tokens): cheap VMEM slab copies.
    # TODO(synk): with a donated src and an element-offset output window these writebacks
    # (~53% of the output HBM traffic) could be skipped entirely via the alias.
    o_ref[0:1] = src_ref[0:1]
    o_ref[Lv + 1:] = src_ref[Lv + 1:]

    # ---- projections on batch-flattened slabs (fat MXU M) --------------------------
    # TODO(synk): on v6e/v7x cast matmul operands to bf16 (keep softmax/LN/residuals f32);
    # kept f32 here to match the f32 reference within a tight tolerance.
    q = linear(q_in, wq_ref, bq_ref) * scale
    k = linear(k_in, wk_ref, bk_ref)
    v = linear(v_in, wv_ref, bv_ref)

    # ---- attention: heads stacked along the row axis -> 2 matmuls total ------------
    # q_s rows ordered (h, l, b); k_s / v_s rows ordered (h, t, b).
    q_s = jnp.concatenate([q[:, h * hd:(h + 1) * hd] for h in range(nhead)], axis=0)
    k_s = jnp.concatenate([k[:, h * hd:(h + 1) * hd] for h in range(nhead)], axis=0)
    v_s = jnp.concatenate([v[:, h * hd:(h + 1) * hd] for h in range(nhead)], axis=0)

    s = jax.lax.dot_general(q_s, k_s, (((1,), (1,)), ((), ())),
                            preferred_element_type=jnp.float32)   # (nhead*Nq, nhead*Nk)
    # Precomputed block-diagonal (batch, head) mask + key-padding bias, added once.
    s = s + bias_ref[...]

    s = s - jnp.max(s, axis=-1, keepdims=True)
    p = jnp.exp(s)
    # TODO(synk): attention dropout (p=0.1) is training-only; identity in eval mode.
    p = p * pl.reciprocal(jnp.sum(p, axis=-1, keepdims=True), approx=True)

    o_s = jnp.dot(p, v_s, preferred_element_type=jnp.float32)      # (nhead*Nq, hd)
    # Re-assemble heads along lanes as a value (no scratch store/reload before WO).
    attn = jnp.concatenate([o_s[h * Nq:(h + 1) * Nq, :] for h in range(nhead)], axis=1)

    # ---- WO + residual -> LN1 -> FFN(relu) -> residual -> LN2 -----------------------
    src2 = resid + linear(attn, wo_ref, bo_ref)
    src3 = _layer_norm(src2, g1_ref[...], be1_ref[...])
    h1 = jnp.maximum(linear(src3, w1_ref, b1_ref), 0.0)
    src2 = src2 + linear(h1, w2_ref, b2_ref)
    out = _layer_norm(src2, g2_ref[...], be2_ref[...])

    # Single full-width store of the updated video tokens (no per-batch masked stores).
    o_ref[1:Lv + 1, :, :] = out.reshape(Lv, B, D)


def t2v_transformer_encoder_layer(src, pos, key_padding_mask, params, video_length, nhead):
    """src/pos: (L, B, D); key_padding_mask: (B, L) bool (True = padded)."""
    L, B, D = src.shape
    Lv = video_length
    Lt = L - Lv - 1
    f32 = jnp.float32

    src = src.astype(f32)
    pos = pos.astype(f32)

    # Combined additive attention bias, hoisted to the wrapper (computed once; 16 KiB here):
    #  * PyTorch's combined mask outer(qmask, kmask) OR key_padding == key_padding alone,
    #    so only the text-key padding contributes.
    #  * plus a block-diagonal mask so batches/heads stacked along M/N never mix.
    # TODO(synk): at production Lv/Lt drop the stacked-score formulation and flash-tile the
    # Lt axis per batch instead (this bias would scale as (H*B*Lv) x (H*B*Lt)).
    kmask = key_padding_mask[:, Lv + 1:].astype(f32)               # (B, Lt), 1.0 == padded
    Nq, Nk = Lv * B, Lt * B
    r = jnp.arange(nhead * Nq, dtype=jnp.int32)
    c = jnp.arange(nhead * Nk, dtype=jnp.int32)
    same_head = (r[:, None] // Nq) == (c[None, :] // Nk)
    same_batch = (r[:, None] % B) == (c[None, :] % B)
    kpad = jnp.tile(jnp.transpose(kmask).reshape(-1), (nhead,))    # (nhead*Nk,), order (h, t, b)
    attn_bias = jnp.where(same_head & same_batch,
                          kpad[None, :] * NEG_INF, NEG_BLOCK).astype(f32)

    p = params
    row = lambda x: x.reshape(1, -1).astype(f32)
    tw = lambda x: jnp.transpose(x).astype(f32)    # pre-transposed (in, out) weights
    weight_args = [
        tw(p['wq']), row(p['bq']),
        tw(p['wk']), row(p['bk']),
        tw(p['wv']), row(p['bv']),
        tw(p['wo']), row(p['bo']),
        tw(p['w1']), row(p['b1']),
        tw(p['w2']), row(p['b2']),
        row(p['g1']), row(p['be1']),
        row(p['g2']), row(p['be2']),
    ]
    n_inputs = 3 + len(weight_args)

    vmem_spec = pl.BlockSpec(memory_space=pltpu.MemorySpace.VMEM)
    # TODO(synk): for production Lv/Lt move to a BlockSpec-tiled grid (parallel q-row axis,
    # Lt reduction axis last, Buffered K/V) so DMA is double-buffered and v7x's 2 TensorCores
    # get a parallel axis; everything fits resident in VMEM at these toy sizes.
    return pl.pallas_call(
        functools.partial(t2v_kernel, nhead, Lv),
        out_shape=jax.ShapeDtypeStruct((L, B, D), f32),
        in_specs=[vmem_spec] * n_inputs,
        out_specs=vmem_spec,
        input_output_aliases={0: 0},   # reuse src's buffer for the output when donatable
        compiler_params=pltpu.CompilerParams(vmem_limit_bytes=32 * 1024 * 1024),
    )(src, pos, attn_bias, *weight_args)


def reference_forward(src, pos, kpm, params, Lv, nhead):
    """Pure-JAX reference mirroring PyTorch forward_post (eval mode)."""
    L, B, D = src.shape
    hd = D // nhead
    scale = 1.0 / np.sqrt(hd)
    pos_src = src + pos
    q_in, k_in, v_in = pos_src[1:Lv + 1], pos_src[Lv + 1:], src[Lv + 1:]
    resid = src[1:Lv + 1]
    qmask = kpm[:, 1:Lv + 1].astype(jnp.float32)
    kmask = kpm[:, Lv + 1:].astype(jnp.float32)
    combined = jnp.logical_or((qmask[:, :, None] * kmask[:, None, :]) > 0.5,
                              kmask[:, None, :] > 0.5)          # (B, Lv, Lt)

    proj = lambda x, w, b: jnp.einsum('lbd,ed->lbe', x, w) + b
    q = proj(q_in, params['wq'], params['bq']) * scale
    k = proj(k_in, params['wk'], params['bk'])
    v = proj(v_in, params['wv'], params['bv'])
    Lq, Lt = q.shape[0], k.shape[0]
    qh = q.reshape(Lq, B, nhead, hd)
    kh = k.reshape(Lt, B, nhead, hd)
    vh = v.reshape(Lt, B, nhead, hd)
    s = jnp.einsum('qbhe,kbhe->bhqk', qh, kh)
    s = jnp.where(combined[:, None, :, :], NEG_INF, s)
    s = s - jnp.max(s, axis=-1, keepdims=True)
    pr = jnp.exp(s)
    pr = pr / jnp.sum(pr, axis=-1, keepdims=True)
    o = jnp.einsum('bhqk,kbhe->qbhe', pr, vh).reshape(Lq, B, D)
    attn_out = jnp.einsum('qbd,ed->qbe', o, params['wo']) + params['bo']
    src2 = resid + attn_out

    def ln(x, g, bb):
        mu = x.mean(-1, keepdims=True)
        var = ((x - mu) ** 2).mean(-1, keepdims=True)
        return (x - mu) / jnp.sqrt(var + LN_EPS) * g + bb

    src3 = ln(src2, params['g1'], params['be1'])
    h1 = jax.nn.relu(jnp.einsum('qbd,fd->qbf', src3, params['w1']) + params['b1'])
    ffn = jnp.einsum('qbf,df->qbd', h1, params['w2']) + params['b2']
    out = ln(src2 + ffn, params['g2'], params['be2'])
    return jnp.concatenate([src[0:1], out, src[Lv + 1:]], axis=0)


if __name__ == "__main__":
    B, D, nhead, dff = 2, 32, 4, 64
    Lv, Lt = 8, 8                 # video_length = 8, text length = 8
    L = 1 + Lv + Lt               # global token + video + text

    key = jax.random.PRNGKey(0)
    ks = jax.random.split(key, 20)
    w = lambda k, shape, s: jax.random.normal(k, shape, jnp.float32) * s
    params = {
        'wq': w(ks[0], (D, D), 0.1), 'bq': w(ks[1], (D,), 0.05),
        'wk': w(ks[2], (D, D), 0.1), 'bk': w(ks[3], (D,), 0.05),
        'wv': w(ks[4], (D, D), 0.1), 'bv': w(ks[5], (D,), 0.05),
        'wo': w(ks[6], (D, D), 0.1), 'bo': w(ks[7], (D,), 0.05),
        'w1': w(ks[8], (dff, D), 0.1), 'b1': w(ks[9], (dff,), 0.05),
        'w2': w(ks[10], (D, dff), 0.1), 'b2': w(ks[11], (D,), 0.05),
        'g1': 1.0 + w(ks[12], (D,), 0.05), 'be1': w(ks[13], (D,), 0.05),
        'g2': 1.0 + w(ks[14], (D,), 0.05), 'be2': w(ks[15], (D,), 0.05),
    }

    src = jax.random.normal(ks[16], (L, B, D), jnp.float32)
    pos = jax.random.normal(ks[17], (L, B, D), jnp.float32)

    # key padding mask (True = padded); keep at least one unpadded text key per batch
    # (fully-padded text keys are a documented divergence from PyTorch, which emits NaN).
    kpm_np = np.zeros((B, L), dtype=bool)
    kpm_np[0, Lv - 1:Lv + 1] = True   # last 2 video tokens of batch 0 padded
    kpm_np[0, L - 3:] = True          # last 3 text tokens of batch 0 padded
    kpm_np[1, L - 2:] = True          # last 2 text tokens of batch 1 padded
    kpm = jnp.asarray(kpm_np)

    # Reference first (src is aliased to the kernel output and could be donated under jit).
    ref = reference_forward(src, pos, kpm, params, Lv, nhead)

    out = t2v_transformer_encoder_layer(src, pos, kpm, params, Lv, nhead)
    out = jax.block_until_ready(out)

    # Slightly loose tolerance: softmax uses the EUP approximate reciprocal on hardware.
    np.testing.assert_allclose(np.asarray(out), np.asarray(ref), atol=3e-3, rtol=3e-3)
    print("KERNEL_OK")
</pallas_src>

<mosaic_0001>
module attributes {stable_mosaic.version = 11 : i64} {
  func.func @t2v_kernel(%arg0: memref<17x2x32xf32, #tpu.memory_space<vmem>>, %arg1: memref<17x2x32xf32, #tpu.memory_space<vmem>>, %arg2: memref<64x64xf32, #tpu.memory_space<vmem>>, %arg3: memref<32x32xf32, #tpu.memory_space<vmem>>, %arg4: memref<1x32xf32, #tpu.memory_space<vmem>>, %arg5: memref<32x32xf32, #tpu.memory_space<vmem>>, %arg6: memref<1x32xf32, #tpu.memory_space<vmem>>, %arg7: memref<32x32xf32, #tpu.memory_space<vmem>>, %arg8: memref<1x32xf32, #tpu.memory_space<vmem>>, %arg9: memref<32x32xf32, #tpu.memory_space<vmem>>, %arg10: memref<1x32xf32, #tpu.memory_space<vmem>>, %arg11: memref<32x64xf32, #tpu.memory_space<vmem>>, %arg12: memref<1x64xf32, #tpu.memory_space<vmem>>, %arg13: memref<64x32xf32, #tpu.memory_space<vmem>>, %arg14: memref<1x32xf32, #tpu.memory_space<vmem>>, %arg15: memref<1x32xf32, #tpu.memory_space<vmem>>, %arg16: memref<1x32xf32, #tpu.memory_space<vmem>>, %arg17: memref<1x32xf32, #tpu.memory_space<vmem>>, %arg18: memref<1x32xf32, #tpu.memory_space<vmem>>, %arg19: memref<17x2x32xf32, #tpu.memory_space<vmem>>) attributes {dimension_semantics = [], scalar_prefetch = 0 : i64, scratch_operands = 0 : i64, tpu.core_type = #tpu.core_type<tc>} {
    %c1 = arith.constant 1 : index
    %c0 = arith.constant 0 : index
    %c0_0 = arith.constant 0 : index
    %0 = vector.load %arg0[%c1, %c0, %c0_0] : memref<17x2x32xf32, #tpu.memory_space<vmem>>, vector<8x2x32xf32>
    %c9 = arith.constant 9 : index
    %c0_1 = arith.constant 0 : index
    %c0_2 = arith.constant 0 : index
    %1 = vector.load %arg0[%c9, %c0_1, %c0_2] : memref<17x2x32xf32, #tpu.memory_space<vmem>>, vector<8x2x32xf32>
    %c1_3 = arith.constant 1 : index
    %c0_4 = arith.constant 0 : index
    %c0_5 = arith.constant 0 : index
    %2 = vector.load %arg1[%c1_3, %c0_4, %c0_5] : memref<17x2x32xf32, #tpu.memory_space<vmem>>, vector<8x2x32xf32>
    %3 = arith.addf %0, %2 : vector<8x2x32xf32>
    %4 = vector.shape_cast %3 : vector<8x2x32xf32> to vector<16x32xf32>
    %c9_6 = arith.constant 9 : index
    %c0_7 = arith.constant 0 : index
    %c0_8 = arith.constant 0 : index
    %5 = vector.load %arg1[%c9_6, %c0_7, %c0_8] : memref<17x2x32xf32, #tpu.memory_space<vmem>>, vector<8x2x32xf32>
    %6 = arith.addf %1, %5 : vector<8x2x32xf32>
    %7 = vector.shape_cast %6 : vector<8x2x32xf32> to vector<16x32xf32>
    %8 = vector.shape_cast %1 : vector<8x2x32xf32> to vector<16x32xf32>
    %9 = vector.shape_cast %0 : vector<8x2x32xf32> to vector<16x32xf32>
    %c0_9 = arith.constant 0 : index
    %c0_10 = arith.constant 0 : index
    %c0_11 = arith.constant 0 : index
    %10 = vector.load %arg0[%c0_9, %c0_10, %c0_11] : memref<17x2x32xf32, #tpu.memory_space<vmem>>, vector<1x2x32xf32>
    %c0_12 = arith.constant 0 : index
    %c0_13 = arith.constant 0 : index
    %c0_14 = arith.constant 0 : index
    %11 = vector.load %arg19[%c0_12, %c0_13, %c0_14] : memref<17x2x32xf32, #tpu.memory_space<vmem>>, vector<1x2x32xf32>
    tpu.vector_store %arg19[%c0_12, %c0_13, %c0_14], %10 {strides = array<i32>} : memref<17x2x32xf32, #tpu.memory_space<vmem>>, vector<1x2x32xf32>,
    %c9_15 = arith.constant 9 : index
    %c0_16 = arith.constant 0 : index
    %c0_17 = arith.constant 0 : index
    %12 = vector.load %arg0[%c9_15, %c0_16, %c0_17] : memref<17x2x32xf32, #tpu.memory_space<vmem>>, vector<8x2x32xf32>
    %c9_18 = arith.constant 9 : index
    %c0_19 = arith.constant 0 : index
    %c0_20 = arith.constant 0 : index
    %13 = vector.load %arg19[%c9_18, %c0_19, %c0_20] : memref<17x2x32xf32, #tpu.memory_space<vmem>>, vector<8x2x32xf32>
    tpu.vector_store %arg19[%c9_18, %c0_19, %c0_20], %12 {strides = array<i32>} : memref<17x2x32xf32, #tpu.memory_space<vmem>>, vector<8x2x32xf32>,
    %c0_21 = arith.constant 0 : index
    %c0_22 = arith.constant 0 : index
    %14 = vector.load %arg3[%c0_21, %c0_22] : memref<32x32xf32, #tpu.memory_space<vmem>>, vector<32x32xf32>
    %cst = arith.constant dense<0.000000e+00> : vector<16x32xf32>
    %15 = tpu.matmul %4, %14, %cst {dimension_numbers = #tpu.dot_dimension_numbers<[1], [0], [0], [1], [0, 0, 1, 1], [], []>} : vector<16x32xf32>, vector<32x32xf32>, vector<16x32xf32> -> vector<16x32xf32>
    %c0_23 = arith.constant 0 : index
    %c0_24 = arith.constant 0 : index
    %16 = vector.load %arg4[%c0_23, %c0_24] : memref<1x32xf32, #tpu.memory_space<vmem>>, vector<1x32xf32>
    %17 = vector.broadcast %16 : vector<1x32xf32> to vector<16x32xf32>
    %18 = arith.addf %15, %17 : vector<16x32xf32>
    %cst_25 = arith.constant 0.353553385 : f32
    %19 = vector.broadcast %cst_25 : f32 to vector<16x32xf32>
    %20 = arith.mulf %18, %19 : vector<16x32xf32>
    %c0_26 = arith.constant 0 : index
    %c0_27 = arith.constant 0 : index
    %21 = vector.load %arg5[%c0_26, %c0_27] : memref<32x32xf32, #tpu.memory_space<vmem>>, vector<32x32xf32>
    %cst_28 = arith.constant dense<0.000000e+00> : vector<16x32xf32>
    %22 = tpu.matmul %7, %21, %cst_28 {dimension_numbers = #tpu.dot_dimension_numbers<[1], [0], [0], [1], [0, 0, 1, 1], [], []>} : vector<16x32xf32>, vector<32x32xf32>, vector<16x32xf32> -> vector<16x32xf32>
    %c0_29 = arith.constant 0 : index
    %c0_30 = arith.constant 0 : index
    %23 = vector.load %arg6[%c0_29, %c0_30] : memref<1x32xf32, #tpu.memory_space<vmem>>, vector<1x32xf32>
    %24 = vector.broadcast %23 : vector<1x32xf32> to vector<16x32xf32>
    %25 = arith.addf %22, %24 : vector<16x32xf32>
    %c0_31 = arith.constant 0 : index
    %c0_32 = arith.constant 0 : index
    %26 = vector.load %arg7[%c0_31, %c0_32] : memref<32x32xf32, #tpu.memory_space<vmem>>, vector<32x32xf32>
    %cst_33 = arith.constant dense<0.000000e+00> : vector<16x32xf32>
    %27 = tpu.matmul %8, %26, %cst_33 {dimension_numbers = #tpu.dot_dimension_numbers<[1], [0], [0], [1], [0, 0, 1, 1], [], []>} : vector<16x32xf32>, vector<32x32xf32>, vector<16x32xf32> -> vector<16x32xf32>
    %c0_34 = arith.constant 0 : index
    %c0_35 = arith.constant 0 : index
    %28 = vector.load %arg8[%c0_34, %c0_35] : memref<1x32xf32, #tpu.memory_space<vmem>>, vector<1x32xf32>
    %29 = vector.broadcast %28 : vector<1x32xf32> to vector<16x32xf32>
    %30 = arith.addf %27, %29 : vector<16x32xf32>
    %31 = vector.extract_strided_slice %20 {offsets = [0, 0], sizes = [16, 8], strides = [1, 1]} : vector<16x32xf32> to vector<16x8xf32>
    %32 = vector.extract_strided_slice %20 {offsets = [0, 8], sizes = [16, 8], strides = [1, 1]} : vector<16x32xf32> to vector<16x8xf32>
    %33 = vector.extract_strided_slice %20 {offsets = [0, 16], sizes = [16, 8], strides = [1, 1]} : vector<16x32xf32> to vector<16x8xf32>
    %34 = vector.extract_strided_slice %20 {offsets = [0, 24], sizes = [16, 8], strides = [1, 1]} : vector<16x32xf32> to vector<16x8xf32>
    %35 = tpu.concatenate %31, %32, %33, %34 in 0 : vector<16x8xf32>, vector<16x8xf32>, vector<16x8xf32>, vector<16x8xf32> -> vector<64x8xf32>
    %36 = vector.extract_strided_slice %25 {offsets = [0, 0], sizes = [16, 8], strides = [1, 1]} : vector<16x32xf32> to vector<16x8xf32>
    %37 = vector.extract_strided_slice %25 {offsets = [0, 8], sizes = [16, 8], strides = [1, 1]} : vector<16x32xf32> to vector<16x8xf32>
    %38 = vector.extract_strided_slice %25 {offsets = [0, 16], sizes = [16, 8], strides = [1, 1]} : vector<16x32xf32> to vector<16x8xf32>
    %39 = vector.extract_strided_slice %25 {offsets = [0, 24], sizes = [16, 8], strides = [1, 1]} : vector<16x32xf32> to vector<16x8xf32>
    %40 = tpu.concatenate %36, %37, %38, %39 in 0 : vector<16x8xf32>, vector<16x8xf32>, vector<16x8xf32>, vector<16x8xf32> -> vector<64x8xf32>
    %41 = vector.extract_strided_slice %30 {offsets = [0, 0], sizes = [16, 8], strides = [1, 1]} : vector<16x32xf32> to vector<16x8xf32>
    %42 = vector.extract_strided_slice %30 {offsets = [0, 8], sizes = [16, 8], strides = [1, 1]} : vector<16x32xf32> to vector<16x8xf32>
    %43 = vector.extract_strided_slice %30 {offsets = [0, 16], sizes = [16, 8], strides = [1, 1]} : vector<16x32xf32> to vector<16x8xf32>
    %44 = vector.extract_strided_slice %30 {offsets = [0, 24], sizes = [16, 8], strides = [1, 1]} : vector<16x32xf32> to vector<16x8xf32>
    %45 = tpu.concatenate %41, %42, %43, %44 in 0 : vector<16x8xf32>, vector<16x8xf32>, vector<16x8xf32>, vector<16x8xf32> -> vector<64x8xf32>
    %cst_36 = arith.constant dense<0.000000e+00> : vector<64x64xf32>
    %46 = tpu.matmul %35, %40, %cst_36 {dimension_numbers = #tpu.dot_dimension_numbers<[1], [1], [0], [0], [0, 0, 1, 0], [], []>} : vector<64x8xf32>, vector<64x8xf32>, vector<64x64xf32> -> vector<64x64xf32>
    %c0_37 = arith.constant 0 : index
    %c0_38 = arith.constant 0 : index
    %47 = vector.load %arg2[%c0_37, %c0_38] : memref<64x64xf32, #tpu.memory_space<vmem>>, vector<64x64xf32>
    %48 = arith.addf %46, %47 : vector<64x64xf32>
    %cst_39 = arith.constant dense<0xFF800000> : vector<64xf32>
    %49 = vector.multi_reduction <maximumf>, %48, %cst_39 [1] : vector<64x64xf32> to vector<64xf32>
    %50 = vector.shape_cast %49 : vector<64xf32> to vector<64x1xf32>
    %51 = vector.broadcast %50 : vector<64x1xf32> to vector<64x64xf32>
    %52 = arith.subf %48, %51 : vector<64x64xf32>
    %53 = math.exp %52 : vector<64x64xf32>
    %cst_40 = arith.constant dense<0.000000e+00> : vector<64xf32>
    %54 = vector.multi_reduction <add>, %53, %cst_40 [1] : vector<64x64xf32> to vector<64xf32>
    %55 = vector.shape_cast %54 : vector<64xf32> to vector<64x1xf32>
    %56 = tpu.reciprocal %55 {approx = true} : vector<64x1xf32> -> vector<64x1xf32>
    %57 = vector.broadcast %56 : vector<64x1xf32> to vector<64x64xf32>
    %58 = arith.mulf %53, %57 : vector<64x64xf32>
    %cst_41 = arith.constant dense<0.000000e+00> : vector<64x8xf32>
    %59 = tpu.matmul %58, %45, %cst_41 {dimension_numbers = #tpu.dot_dimension_numbers<[1], [0], [0], [1], [0, 0, 1, 1], [], []>} : vector<64x64xf32>, vector<64x8xf32>, vector<64x8xf32> -> vector<64x8xf32>
    %60 = vector.extract_strided_slice %59 {offsets = [0, 0], sizes = [16, 8], strides = [1, 1]} : vector<64x8xf32> to vector<16x8xf32>
    %61 = vector.extract_strided_slice %59 {offsets = [16, 0], sizes = [16, 8], strides = [1, 1]} : vector<64x8xf32> to vector<16x8xf32>
    %62 = vector.extract_strided_slice %59 {offsets = [32, 0], sizes = [16, 8], strides = [1, 1]} : vector<64x8xf32> to vector<16x8xf32>
    %63 = vector.extract_strided_slice %59 {offsets = [48, 0], sizes = [16, 8], strides = [1, 1]} : vector<64x8xf32> to vector<16x8xf32>
    %64 = tpu.concatenate %60, %61, %62, %63 in 1 : vector<16x8xf32>, vector<16x8xf32>, vector<16x8xf32>, vector<16x8xf32> -> vector<16x32xf32>
    %c0_42 = arith.constant 0 : index
    %c0_43 = arith.constant 0 : index
    %65 = vector.load %arg9[%c0_42, %c0_43] : memref<32x32xf32, #tpu.memory_space<vmem>>, vector<32x32xf32>
    %cst_44 = arith.constant dense<0.000000e+00> : vector<16x32xf32>
    %66 = tpu.matmul %64, %65, %cst_44 {dimension_numbers = #tpu.dot_dimension_numbers<[1], [0], [0], [1], [0, 0, 1, 1], [], []>} : vector<16x32xf32>, vector<32x32xf32>, vector<16x32xf32> -> vector<16x32xf32>
    %c0_45 = arith.constant 0 : index
    %c0_46 = arith.constant 0 : index
    %67 = vector.load %arg10[%c0_45, %c0_46] : memref<1x32xf32, #tpu.memory_space<vmem>>, vector<1x32xf32>
    %68 = vector.broadcast %67 : vector<1x32xf32> to vector<16x32xf32>
    %69 = arith.addf %66, %68 : vector<16x32xf32>
    %70 = arith.addf %9, %69 : vector<16x32xf32>
    %c0_47 = arith.constant 0 : index
    %c0_48 = arith.constant 0 : index
    %71 = vector.load %arg15[%c0_47, %c0_48] : memref<1x32xf32, #tpu.memory_space<vmem>>, vector<1x32xf32>
    %c0_49 = arith.constant 0 : index
    %c0_50 = arith.constant 0 : index
    %72 = vector.load %arg16[%c0_49, %c0_50] : memref<1x32xf32, #tpu.memory_space<vmem>>, vector<1x32xf32>
    %cst_51 = arith.constant dense<0.000000e+00> : vector<16xf32>
    %73 = vector.multi_reduction <add>, %70, %cst_51 [1] : vector<16x32xf32> to vector<16xf32>
    %74 = vector.shape_cast %73 : vector<16xf32> to vector<16x1xf32>
    %cst_52 = arith.constant 3.200000e+01 : f32
    %75 = vector.broadcast %cst_52 : f32 to vector<16x1xf32>
    %76 = arith.divf %74, %75 : vector<16x1xf32>
    %77 = vector.broadcast %76 : vector<16x1xf32> to vector<16x32xf32>
    %78 = arith.subf %70, %77 : vector<16x32xf32>
    %79 = arith.mulf %78, %78 : vector<16x32xf32>
    %cst_53 = arith.constant dense<0.000000e+00> : vector<16xf32>
    %80 = vector.multi_reduction <add>, %79, %cst_53 [1] : vector<16x32xf32> to vector<16xf32>
    %81 = vector.shape_cast %80 : vector<16xf32> to vector<16x1xf32>
    %cst_54 = arith.constant 3.200000e+01 : f32
    %82 = vector.broadcast %cst_54 : f32 to vector<16x1xf32>
    %83 = arith.divf %81, %82 : vector<16x1xf32>
    %84 = vector.broadcast %76 : vector<16x1xf32> to vector<16x32xf32>
    %85 = arith.subf %70, %84 : vector<16x32xf32>
    %cst_55 = arith.constant 9.99999974E-6 : f32
    %86 = vector.broadcast %cst_55 : f32 to vector<16x1xf32>
    %87 = arith.addf %83, %86 : vector<16x1xf32>
    %88 = math.rsqrt %87 : vector<16x1xf32>
    %89 = vector.broadcast %88 : vector<16x1xf32> to vector<16x32xf32>
    %90 = arith.mulf %85, %89 : vector<16x32xf32>
    %91 = vector.broadcast %71 : vector<1x32xf32> to vector<16x32xf32>
    %92 = arith.mulf %90, %91 : vector<16x32xf32>
    %93 = vector.broadcast %72 : vector<1x32xf32> to vector<16x32xf32>
    %94 = arith.addf %92, %93 : vector<16x32xf32>
    %c0_56 = arith.constant 0 : index
    %c0_57 = arith.constant 0 : index
    %95 = vector.load %arg11[%c0_56, %c0_57] : memref<32x64xf32, #tpu.memory_space<vmem>>, vector<32x64xf32>
    %cst_58 = arith.constant dense<0.000000e+00> : vector<16x64xf32>
    %96 = tpu.matmul %94, %95, %cst_58 {dimension_numbers = #tpu.dot_dimension_numbers<[1], [0], [0], [1], [0, 0, 1, 1], [], []>} : vector<16x32xf32>, vector<32x64xf32>, vector<16x64xf32> -> vector<16x64xf32>
    %c0_59 = arith.constant 0 : index
    %c0_60 = arith.constant 0 : index
    %97 = vector.load %arg12[%c0_59, %c0_60] : memref<1x64xf32, #tpu.memory_space<vmem>>, vector<1x64xf32>
    %98 = vector.broadcast %97 : vector<1x64xf32> to vector<16x64xf32>
    %99 = arith.addf %96, %98 : vector<16x64xf32>
    %cst_61 = arith.constant 0.000000e+00 : f32
    %100 = vector.broadcast %cst_61 : f32 to vector<16x64xf32>
    %101 = arith.maximumf %99, %100 : vector<16x64xf32>
    %c0_62 = arith.constant 0 : index
    %c0_63 = arith.constant 0 : index
    %102 = vector.load %arg13[%c0_62, %c0_63] : memref<64x32xf32, #tpu.memory_space<vmem>>, vector<64x32xf32>
    %cst_64 = arith.constant dense<0.000000e+00> : vector<16x32xf32>
    %103 = tpu.matmul %101, %102, %cst_64 {dimension_numbers = #tpu.dot_dimension_numbers<[1], [0], [0], [1], [0, 0, 1, 1], [], []>} : vector<16x64xf32>, vector<64x32xf32>, vector<16x32xf32> -> vector<16x32xf32>
    %c0_65 = arith.constant 0 : index
    %c0_66 = arith.constant 0 : index
    %104 = vector.load %arg14[%c0_65, %c0_66] : memref<1x32xf32, #tpu.memory_space<vmem>>, vector<1x32xf32>
    %105 = vector.broadcast %104 : vector<1x32xf32> to vector<16x32xf32>
    %106 = arith.addf %103, %105 : vector<16x32xf32>
    %107 = arith.addf %70, %106 : vector<16x32xf32>
    %c0_67 = arith.constant 0 : index
    %c0_68 = arith.constant 0 : index
    %108 = vector.load %arg17[%c0_67, %c0_68] : memref<1x32xf32, #tpu.memory_space<vmem>>, vector<1x32xf32>
    %c0_69 = arith.constant 0 : index
    %c0_70 = arith.constant 0 : index
    %109 = vector.load %arg18[%c0_69, %c0_70] : memref<1x32xf32, #tpu.memory_space<vmem>>, vector<1x32xf32>
    %cst_71 = arith.constant dense<0.000000e+00> : vector<16xf32>
    %110 = vector.multi_reduction <add>, %107, %cst_71 [1] : vector<16x32xf32> to vector<16xf32>
    %111 = vector.shape_cast %110 : vector<16xf32> to vector<16x1xf32>
    %cst_72 = arith.constant 3.200000e+01 : f32
    %112 = vector.broadcast %cst_72 : f32 to vector<16x1xf32>
    %113 = arith.divf %111, %112 : vector<16x1xf32>
    %114 = vector.broadcast %113 : vector<16x1xf32> to vector<16x32xf32>
    %115 = arith.subf %107, %114 : vector<16x32xf32>
    %116 = arith.mulf %115, %115 : vector<16x32xf32>
    %cst_73 = arith.constant dense<0.000000e+00> : vector<16xf32>
    %117 = vector.multi_reduction <add>, %116, %cst_73 [1] : vector<16x32xf32> to vector<16xf32>
    %118 = vector.shape_cast %117 : vector<16xf32> to vector<16x1xf32>
    %cst_74 = arith.constant 3.200000e+01 : f32
    %119 = vector.broadcast %cst_74 : f32 to vector<16x1xf32>
    %120 = arith.divf %118, %119 : vector<16x1xf32>
    %121 = vector.broadcast %113 : vector<16x1xf32> to vector<16x32xf32>
    %122 = arith.subf %107, %121 : vector<16x32xf32>
    %cst_75 = arith.constant 9.99999974E-6 : f32
    %123 = vector.broadcast %cst_75 : f32 to vector<16x1xf32>
    %124 = arith.addf %120, %123 : vector<16x1xf32>
    %125 = math.rsqrt %124 : vector<16x1xf32>
    %126 = vector.broadcast %125 : vector<16x1xf32> to vector<16x32xf32>
    %127 = arith.mulf %122, %126 : vector<16x32xf32>
    %128 = vector.broadcast %108 : vector<1x32xf32> to vector<16x32xf32>
    %129 = arith.mulf %127, %128 : vector<16x32xf32>
    %130 = vector.broadcast %109 : vector<1x32xf32> to vector<16x32xf32>
    %131 = arith.addf %129, %130 : vector<16x32xf32>
    %132 = vector.shape_cast %131 : vector<16x32xf32> to vector<8x2x32xf32>
    %c1_76 = arith.constant 1 : index
    %c0_77 = arith.constant 0 : index
    %c0_78 = arith.constant 0 : index
    %133 = vector.load %arg19[%c1_76, %c0_77, %c0_78] : memref<17x2x32xf32, #tpu.memory_space<vmem>>, vector<8x2x32xf32>
    tpu.vector_store %arg19[%c1_76, %c0_77, %c0_78], %132 {strides = array<i32>} : memref<17x2x32xf32, #tpu.memory_space<vmem>>, vector<8x2x32xf32>,
    return
  }
}

</mosaic_0001>

<bundles_post_ra>
// kernel: tpu_custom_call.1
= control target key start
LH: loop header
LB: loop body
LE: loop exit
PB: predicated region body
PF: predicated region fallthrough
CT: control target
= control target key end

     0   :  { %s3626_s0 = inlined_call_operand.hbm [shape: f32[17,2,32], index: 0, kind: input, shape index: {}, may-alias: {0,19}]   ;;  %s3627_s1 = inlined_call_operand.vmem [shape: f32[17,2,32], index: 1, kind: input, shape index: {}]   ;;  %s3628_s2 = inlined_call_operand.vmem [shape: f32[64,64], index: 2, kind: input, shape index: {}]   ;;  %s3629_s3 = inlined_call_operand.vmem [shape: f32[32,32], index: 3, kind: input, shape index: {}]   ;;  %s3630_s4 = inlined_call_operand.hbm [shape: f32[1,32], index: 4, kind: input, shape index: {}]   ;;  %s3631_s5 = inlined_call_operand.hbm [shape: f32[32,32], index: 5, kind: input, shape index: {}]   ;;  %s3632_s6 = inlined_call_operand.hbm [shape: f32[1,32], index: 6, kind: input, shape index: {}]   ;;  %s3633_s7 = inlined_call_operand.hbm [shape: f32[32,32], index: 7, kind: input, shape index: {}]   ;;  %s3634_s8 = inlined_call_operand.hbm [shape: f32[1,32], index: 8, kind: input, shape index: {}]   ;;  %s3635_s9 = inlined_call_operand.vmem [shape: f32[32,32], index: 9, kind: input, shape index: {}]   ;;  %s3636_s10 = inlined_call_operand.vmem [shape: f32[1,32], index: 10, kind: input, shape index: {}]   ;;  %s3637_s11 = inlined_call_operand.hbm [shape: f32[32,64], index: 11, kind: input, shape index: {}]   ;;  %s3638_s12 = inlined_call_operand.vmem [shape: f32[1,64], index: 12, kind: input, shape index: {}]   ;;  %s3639_s13 = inlined_call_operand.vmem [shape: f32[64,32], index: 13, kind: input, shape index: {}]   ;;  %s3640_s14 = inlined_call_operand.vmem [shape: f32[1,32], index: 14, kind: input, shape index: {}]   ;;  %s3641_s15 = inlined_call_operand.vmem [shape: f32[1,32], index: 15, kind: input, shape index: {}]   ;;  %s3642_s16 = inlined_call_operand.vmem [shape: f32[1,32], index: 16, kind: input, shape index: {}]   ;;  %s3643_s17 = inlined_call_operand.vmem [shape: f32[1,32], index: 17, kind: input, shape index: {}]   ;;  %s3644_s18 = inlined_call_operand.vmem [shape: f32[1,32], index: 18, kind: input, shape index: {}]   ;;  %s3645_s19 = inlined_call_operand.hbm [shape: f32[17,2,32], index: 19, kind: output, shape index: {}, may-alias: {0,19}]  }
   0x1   :  { %3650 = sst [smem:[#allocation20_spill]] %s3626_s0 }
   0x2   :  { %3651 = sst [smem:[#allocation21_spill]] %s3627_s1 }
   0x3   :  { %3652 = sst [smem:[#allocation22_spill]] %s3628_s2 }
   0x4   :  { %3653 = sst [smem:[#allocation23_spill]] %s3629_s3 }
   0x5   :  { %24 = vsyncpa [#allocation3], 0 }
   0x6   :  { %25 = vsyncpa [#allocation6], 0 }
   0x7   :  { %26 = vsyncpa [#allocation9], 0 }
   0x8   :  { %27 = vsyncpa [#allocation12], 0 }
   0x9   :  { %28 = vsyncpa [#allocation4], 0  ;;  %s2829_s0 = smov [#allocation5]   ;;  %s2830_s20 = smov [#allocation8]  }
   0xa   :  { %s53_s30 = sshll.u32 %s2829_s0, 4  ;;  %s75_s21 = sshll.u32 %s2830_s20, 4  ;;  %s54_s30 = int_to_ptr.vmem [resolvable:$true] %s53_s30  ;;  %s76_s21 = int_to_ptr.vmem [resolvable:$true] %s75_s21 }
   0xb   :  { %s2643_s2 = scalar_lea.hbm %s3630_s4, 16 }
   0xc   :  { %p2644_p0 = scmp.ne.s32.totalorder %s3630_s4, %s2643_s2  ;;  %p2647_p1 = scmp.lt.u32.totalorder %s2643_s2, %s3630_s4 }
   0xe   :  { %p2649_p2 = pnand %p2647_p1, %p2644_p0 }
  0x10   :  { %2652 = shalt.err (!%p2649_p2)
}
  0x11   :  { %s2653_s26 = scalar_lea.vmem %s54_s30, 16  ;;  %s2657_s27 = scalar_lea.vmem %s54_s30, 32 }
  0x12   :  { %p2654_p3 = scmp.ne.s32.totalorder %s54_s30, %s2653_s26  ;;  %p2658_p4 = scmp.lt.s32.totalorder %s54_s30, %s54_s30 }
  0x13   :  { %p2659_p5 = scmp.lt.s32.totalorder %s2657_s27, %s2653_s26 }
  0x15   :  { %p2660_p6 = por %p2659_p5, %p2658_p4 }
  0x17   :  { %p2661_p7 = pnand %p2660_p6, %p2654_p3 }
  0x19   :  { %2664 = shalt.err (!%p2661_p7)
}
  0x1a   :  { %56 = dma.hbm_to_vmem [thread:$0]  %s3630_s4, 16, %s54_s30, [#allocation6]  }
  0x1b   :  { %s2665_s1 = scalar_lea.hbm %s3632_s6, 16 }
  0x1c   :  { %p2666_p8 = scmp.ne.s32.totalorder %s3632_s6, %s2665_s1  ;;  %p2669_p9 = scmp.lt.u32.totalorder %s2665_s1, %s3632_s6 }
  0x1e   :  { %p2671_p10 = pnand %p2669_p9, %p2666_p8 }
  0x20   :  { %2674 = shalt.err (!%p2671_p10)
}
  0x21   :  { %s2675_s25 = scalar_lea.vmem %s76_s21, 16  ;;  %s2679_s3 = scalar_lea.vmem %s76_s21, 32 }
  0x22   :  { %p2676_p11 = scmp.ne.s32.totalorder %s76_s21, %s2675_s25  ;;  %p2680_p12 = scmp.lt.s32.totalorder %s76_s21, %s76_s21 }
  0x23   :  { %p2681_p13 = scmp.lt.s32.totalorder %s2679_s3, %s2675_s25 }
  0x25   :  { %p2682_p0 = por %p2681_p13, %p2680_p12 }
  0x27   :  { %p2683_p1 = pnand %p2682_p0, %p2676_p11 }
  0x29   :  { %2686 = shalt.err (!%p2683_p1)
}
  0x2a   :  { %78 = dma.hbm_to_vmem [thread:$0]  %s3632_s6, 16, %s76_s21, [#allocation9]  }
  0x2b   :  { %s2831_s26 = smov [#allocation11]   ;;  %s2832_s28 = smov [#allocation2]  }
  0x2c   :  { %s97_s27 = sshll.u32 %s2831_s26, 4  ;;  %s34_s29 = sshll.u32 %s2832_s28, 4  ;;  %s98_s27 = int_to_ptr.vmem [resolvable:$true] %s97_s27  ;;  %s2975_s29 = int_to_ptr.vmem [resolvable:$true] %s34_s29 }
  0x2d   :  { %s2687_s1 = scalar_lea.hbm %s3634_s8, 16 }
  0x2e   :  { %p2688_p2 = scmp.ne.s32.totalorder %s3634_s8, %s2687_s1  ;;  %p2691_p3 = scmp.lt.u32.totalorder %s2687_s1, %s3634_s8 }
  0x30   :  { %p2693_p4 = pnand %p2691_p3, %p2688_p2 }
  0x32   :  { %2696 = shalt.err (!%p2693_p4)
}
  0x33   :  { %s2697_s6 = scalar_lea.vmem %s98_s27, 16  ;;  %s2701_s21 = scalar_lea.vmem %s98_s27, 32 }
  0x34   :  { %p2698_p5 = scmp.ne.s32.totalorder %s98_s27, %s2697_s6  ;;  %p2702_p6 = scmp.lt.s32.totalorder %s98_s27, %s98_s27 }
  0x35   :  { %p2703_p7 = scmp.lt.s32.totalorder %s2701_s21, %s2697_s6 }
  0x37   :  { %p2704_p8 = por %p2703_p7, %p2702_p6 }
  0x39   :  { %p2705_p9 = pnand %p2704_p8, %p2698_p5 }
  0x3b   :  { %2708 = shalt.err (!%p2705_p9)
}
  0x3c   :  { %100 = dma.hbm_to_vmem [thread:$0]  %s3634_s8, 16, %s98_s27, [#allocation12]  }
  0x3d   :  { %s3654_s26 = sld [smem:[#allocation20_spill]] }
  0x43   :  { %s2709_s28 = scalar_lea.hbm %s3654_s26, 544 }
  0x44   :  { %p2710_p10 = scmp.ne.s32.totalorder %s3654_s26, %s2709_s28  ;;  %p2713_p11 = scmp.lt.u32.totalorder %s2709_s28, %s3654_s26 }
  0x46   :  { %p2715_p12 = pnand %p2713_p11, %p2710_p10 }
  0x48   :  { %2718 = shalt.err (!%p2715_p12)
}
  0x49   :  { %s2719_s2 = scalar_lea.vmem %s2975_s29, 544  ;;  %p2724_p0 = scmp.lt.s32.totalorder %s2975_s29, %s2975_s29 }
  0x4a   :  { %p2720_p13 = scmp.ne.s32.totalorder %s2975_s29, %s2719_s2  ;;  %p2725_p1 = scmp.lt.s32.totalorder %s2719_s2, %s2719_s2 }
  0x4c   :  { %p2726_p2 = por %p2725_p1, %p2724_p0 }
  0x4e   :  { %p2727_p3 = pnand %p2726_p2, %p2720_p13 }
  0x50   :  { %2730 = shalt.err (!%p2727_p3)
}
  0x51   :  { %s2833_s8 = smov 32   ;;  %s2834_s27 = smov 2  }
  0x52   :  { %40 = dma.hbm_to_vmem [thread:$0]  %s3654_s26, 544, %s2975_s29, [#allocation3], %s2833_s8, %s2833_s8, %s2834_s27  }
  0x53   :  { %s2835_s6 = smov [#allocation7]   ;;  %s2731_s4 = scalar_lea.hbm %s3631_s5, 512 }
  0x54   :  { %s62_s21 = sshll.u32 %s2835_s6, 4  ;;  %p2732_p4 = scmp.ne.s32.totalorder %s3631_s5, %s2731_s4  ;;  %s63_s21 = int_to_ptr.vmem [resolvable:$true] %s62_s21 }
  0x55   :  { %p2735_p5 = scmp.lt.u32.totalorder %s2731_s4, %s3631_s5 }
  0x57   :  { %p2737_p6 = pnand %p2735_p5, %p2732_p4 }
  0x59   :  { %2740 = shalt.err (!%p2737_p6)
}
  0x5a   :  { %s2741_s1 = scalar_lea.vmem %s63_s21, 512  ;;  %p2746_p8 = scmp.lt.s32.totalorder %s63_s21, %s63_s21 }
  0x5b   :  { %p2742_p7 = scmp.ne.s32.totalorder %s63_s21, %s2741_s1  ;;  %p2747_p9 = scmp.lt.s32.totalorder %s2741_s1, %s2741_s1 }
  0x5d   :  { %p2748_p10 = por %p2747_p9, %p2746_p8 }
  0x5f   :  { %p2749_p11 = pnand %p2748_p10, %p2742_p7 }
  0x61   :  { %2752 = shalt.err (!%p2749_p11)
}
  0x62   :  { %s2836_s29 = smov 128   ;;  %s2837_s26 = smov 8  }
  0x63   :  { %68 = dma.hbm_to_vmem [thread:$0]  %s3631_s5, 512, %s63_s21, [#allocation6], %s2836_s29, %s2836_s29, %s2837_s26  }
  0x64   :  { %s2838_s23 = smov [#allocation10]   ;;  %s2839_s6 = smov [#allocation13]  }
  0x65   :  { %s84_s24 = sshll.u32 %s2838_s23, 4  ;;  %s110_s25 = sshll.u32 %s2839_s6, 4  ;;  %s85_s24 = int_to_ptr.vmem [resolvable:$true] %s84_s24  ;;  %s111_s25 = int_to_ptr.vmem [resolvable:$true] %s110_s25 }
  0x66   :  { %s2753_s30 = scalar_lea.hbm %s3633_s7, 512 }
  0x67   :  { %p2754_p12 = scmp.ne.s32.totalorder %s3633_s7, %s2753_s30  ;;  %p2757_p13 = scmp.lt.u32.totalorder %s2753_s30, %s3633_s7 }
  0x69   :  { %p2759_p0 = pnand %p2757_p13, %p2754_p12 }
  0x6b   :  { %2762 = shalt.err (!%p2759_p0)
}
  0x6c   :  { %s2763_s5 = scalar_lea.vmem %s85_s24, 512  ;;  %p2768_p2 = scmp.lt.s32.totalorder %s85_s24, %s85_s24 }
  0x6d   :  { %p2764_p1 = scmp.ne.s32.totalorder %s85_s24, %s2763_s5  ;;  %p2769_p3 = scmp.lt.s32.totalorder %s2763_s5, %s2763_s5 }
  0x6f   :  { %p2770_p4 = por %p2769_p3, %p2768_p2 }
  0x71   :  { %p2771_p5 = pnand %p2770_p4, %p2764_p1 }
  0x73   :  { %2774 = shalt.err (!%p2771_p5)
}
  0x74   :  { %90 = dma.hbm_to_vmem [thread:$0]  %s3633_s7, 512, %s85_s24, [#allocation9], %s2836_s29, %s2836_s29, %s2837_s26  }
  0x75   :  { %s2775_s6 = scalar_lea.hbm %s3637_s11, 512 }
  0x76   :  { %p2776_p6 = scmp.ne.s32.totalorder %s3637_s11, %s2775_s6  ;;  %p2779_p7 = scmp.lt.u32.totalorder %s2775_s6, %s3637_s11 }
  0x78   :  { %p2781_p8 = pnand %p2779_p7, %p2776_p6 }
  0x7a   :  { %2784 = shalt.err (!%p2781_p8)
}
  0x7b   :  { %s2785_s0 = scalar_lea.vmem %s111_s25, 512  ;;  %p2790_p10 = scmp.lt.s32.totalorder %s111_s25, %s111_s25 }
  0x7c   :  { %p2786_p9 = scmp.ne.s32.totalorder %s111_s25, %s2785_s0  ;;  %p2791_p11 = scmp.lt.s32.totalorder %s2785_s0, %s2785_s0 }
  0x7e   :  { %p2792_p12 = por %p2791_p11, %p2790_p10 }
  0x80   :  { %p2793_p13 = pnand %p2792_p12, %p2786_p9 }
  0x82   :  { %2796 = shalt.err (!%p2793_p13)
}
  0x83   :  { %116 = dma.hbm_to_vmem [thread:$0]  %s3637_s11, 512, %s111_s25, [#allocation12], %s2836_s29, %s2836_s29, %s2837_s26  }
  0x84   :  { %2819 = dma.done.wait [#allocation3], 544  }
  0x85   :  { %2820 = vsyncadd [#allocation3], 4294966752 }
  0x86   :  { %2821 = dma.done.wait [#allocation6], 528  }
  0x87   :  { %2822 = vsyncadd [#allocation6], 4294966768 }
  0x88   :  { %2823 = dma.done.wait [#allocation9], 528  }
  0x89   :  { %2824 = vsyncadd [#allocation9], 4294966768 }
  0x8a   :  { %2825 = dma.done.wait [#allocation12], 528  }
  0x8b   :  { %2826 = vsyncadd [#allocation12], 4294966768  ;;  %v2840_v0 = vmov 1983009808   ;;  %v248_v2 = vlaneseq  ;;  %v359_v3 = vld [vmem:[#allocation7] sm:$0xff]  ;;  %v360_v4 = vld [vmem:[#allocation7 + $0x8] sm:$0xff] }
  0x8c   :  { %v246_v1 = vunpack.c.l.s4 %v2840_v0  ;;  %v361_v5 = vld [vmem:[#allocation7 + $0x10] sm:$0xff]  ;;  %v2463_v8 = vpack.c.bf16 %v360_v4, %v359_v3  ;;  %v362_v9 = vld [vmem:[#allocation7 + $0x18] sm:$0xff]  ;;  %v3056_v10 = vld [vmem:[#allocation2 + $0x12] sm:$0x3]  ;;  %s3655_s25 = sld [smem:[#allocation21_spill]]  ;;  %s3656_s29 = sld [smem:[#allocation23_spill]] }
  0x8d   :  { %v3054_v7 = vshrl.u32 %v248_v2, 7  ;;  %v3058_v11 = vld [vmem:[#allocation2 + $0x14] sm:$0x3]  ;;  %v2467_v12 = vpack.c.bf16 %v362_v9, %v361_v5  ;;  %v3060_v13 = vld [vmem:[#allocation2 + $0x16] sm:$0x3]  ;;  %vm277_vm0 = vcmask 261120  }
  0x8e   :  { %v247_v6 = vunpack.c.0.s8 %v246_v1  ;;  %v3062_v14 = vld [vmem:[#allocation2 + $0x18] sm:$0x3]  ;;  %v510_v16 = vcombine.low %v3056_v10, %v3058_v11  ;;  %2464 = vmatprep.subr.bf16.mxu1 %v2463_v8  ;;  %v3087_v26 = vld [vmem:[#allocation2 + $0x1a] sm:$0x3]  ;;  %v3089_v27 = vld [vmem:[#allocation2 + $0x1c] sm:$0x3] }
  0x8f   :  { %v511_v21 = vcombine.low %v3060_v13, %v3062_v14  ;;  %2466 = vmatpush3.bf16.msra.mxu1 %v2463_v8  ;;  %v3091_v28 = vld [vmem:[#allocation2 + $0x1e] sm:$0x3]  ;;  %v3093_v29 = vld [vmem:[#allocation2 + $0x20] sm:$0x3]  ;;  %v527_v32 = vcombine.low %v3087_v26, %v3089_v27  ;;  %v3129_v50 = vld [vmem:[#allocation2 + $0x2] sm:$0x3] }
  0x90   :  { %v3085_v25 = vsub.s32 %v247_v6, %v3054_v7  ;;  %2468 = vmatprep.subr.bf16.mxu1 %v2467_v12  ;;  %v528_v42 = vcombine.low %v3091_v28, %v3093_v29  ;;  %v3131_v51 = vld [vmem:[#allocation2 + $0x4] sm:$0x3]  ;;  %v3133_v52 = vld [vmem:[#allocation2 + $0x6] sm:$0x3]  ;;  %v3135_v55 = vld [vmem:[#allocation2 + $0x8] sm:$0x3] }
  0x91   :  { %v3152_v0 = vld [vmem:[#allocation2 + $0xa] sm:$0x3]  ;;  %v3157_v4 = vld [vmem:[#allocation2 + $0xc] sm:$0x3]  ;;  %v3159_v5 = vld [vmem:[#allocation2 + $0xe] sm:$0x3] }
  0x92   :  { %v2199_v15 = vld [vmem:[%s3655_s25 + $0x12] sm:$0x3]  ;;  %v2200_v17 = vld [vmem:[%s3655_s25 + $0x14] sm:$0x3]  ;;  %v2201_v18 = vld [vmem:[%s3655_s25 + $0x16] sm:$0x3] }
  0x93   :  { %v2202_v19 = vld [vmem:[%s3655_s25 + $0x18] sm:$0x3]  ;;  %v196_v20 = vadd.f32 %v2199_v15, %v3056_v10  ;;  %v197_v22 = vadd.f32 %v2200_v17, %v3058_v11  ;;  %v198_v23 = vadd.f32 %v2201_v18, %v3060_v13  ;;  %v2203_v30 = vld [vmem:[%s3655_s25 + $0x1a] sm:$0x3]  ;;  %v2204_v31 = vld [vmem:[%s3655_s25 + $0x1c] sm:$0x3]  ;;  %2470 = vmatpush3.bf16.msra.mxu1 %v2467_v12 }
  0x94   :  { %v199_v24 = vadd.f32 %v2202_v19, %v3062_v14  ;;  %v2205_v35 = vld [vmem:[%s3655_s25 + $0x1e] sm:$0x3]  ;;  %v2206_v36 = vld [vmem:[%s3655_s25 + $0x20] sm:$0x3]  ;;  %v200_v37 = vadd.f32 %v2203_v30, %v3087_v26  ;;  %v201_v38 = vadd.f32 %v2204_v31, %v3089_v27  ;;  %v225_v43 = vld [vmem:[%s3656_s29 + $0x8] sm:$0xff]  ;;  %vm679_vm1 = vcmask 64512  }
  0x95   :  { %v378_v33 = vcombine.low %v196_v20, %v197_v22  ;;  %v224_v39 = vld [vmem:[%s3656_s29] sm:$0xff]  ;;  %v202_v40 = vadd.f32 %v2205_v35, %v3091_v28  ;;  %v203_v41 = vadd.f32 %v2206_v36, %v3093_v29  ;;  %v226_v44 = vld [vmem:[%s3656_s29 + $0x10] sm:$0xff]  ;;  %v227_v45 = vld [vmem:[%s3656_s29 + $0x18] sm:$0xff]  ;;  %s2842_s2 = smov 120   ;;  %s2843_s23 = smov 112   ;;  %vm817_vm3 = vcmask 523264  }
  0x96   :  { %v379_v34 = vcombine.low %v198_v23, %v199_v24  ;;  %v395_v48 = vcombine.low %v200_v37, %v201_v38  ;;  %v2455_v49 = vpack.c.bf16 %v225_v43, %v224_v39  ;;  %v2459_v54 = vpack.c.bf16 %v227_v45, %v226_v44  ;;  %v2191_v56 = vld [vmem:[%s3655_s25 + $0x2] sm:$0x3]  ;;  %v2192_v57 = vld [vmem:[%s3655_s25 + $0x4] sm:$0x3]  ;;  %v2193_v60 = vld [vmem:[%s3655_s25 + $0x6] sm:$0x3] }
  0x97   :  { %v386_v46 = vrot.slane %v378_v33, %v3085_v25  ;;  %v396_v53 = vcombine.low %v202_v40, %v203_v41  ;;  %v2194_v61 = vld [vmem:[%s3655_s25 + $0x8] sm:$0x3]  ;;  %v179_v62 = vadd.f32 %v2191_v56, %v3129_v50  ;;  %v180_v63 = vadd.f32 %v2192_v57, %v3131_v51  ;;  %v3161_v6 = vld [vmem:[#allocation2 + $0x10] sm:$0x3]  ;;  %v2195_v9 = vld [vmem:[%s3655_s25 + $0xa] sm:$0x3] }
  0x98   :  { %v393_v47 = vrot.slane %v379_v34, %v3085_v25  ;;  %v403_v59 = vrot.slane %v395_v48, %v3085_v25  ;;  %2456 = vmatprep.subr.bf16.mxu0 %v2455_v49  ;;  %v181_v2 = vadd.f32 %v2193_v60, %v3133_v52  ;;  %v182_v3 = vadd.f32 %v2194_v61, %v3135_v55  ;;  %v2196_v12 = vld [vmem:[%s3655_s25 + $0xc] sm:$0x3]  ;;  %v2197_v15 = vld [vmem:[%s3655_s25 + $0xe] sm:$0x3]  ;;  %v2198_v19 = vld [vmem:[%s3655_s25 + $0x10] sm:$0x3] }
  0x99   :  { %v410_v1 = vrot.slane %v396_v53, %v3085_v25  ;;  %2458 = vmatpush3.bf16.msra.mxu0 %v2455_v49  ;;  %v243_v8 = vcombine.low %v179_v62, %v180_v63  ;;  %v183_v20 = vadd.f32 %v2195_v9, %v3152_v0  ;;  %v184_v22 = vadd.f32 %v2196_v12, %v3157_v4  ;;  %v2210_v39 = vld [vmem:[#allocation8] ss:$0 sm:$0xff]  ;;  %vm3189_vm2 = vmpackc.low %vm679_vm1, %vm679_vm1  ;;  %v2207_v48 = vld [vmem:[#allocation5] ss:$0 sm:$0xff]  ;;  %s2841_s25 = smov 104   ;;  %s3659_s4 = sld [smem:[#allocation22_spill]] }
  0x9a   :  { %v394_v58 = vcombine.low %v386_v46, %v393_v47  ;;  %2460 = vmatprep.subr.bf16.mxu0 %v2459_v54  ;;  %v244_v18 = vcombine.low %v181_v2, %v182_v3  ;;  %v185_v24 = vadd.f32 %v2197_v15, %v3159_v5  ;;  %v186_v30 = vadd.f32 %v2198_v19, %v3161_v6  ;;  %v492_v60 = vld [vmem:[#allocation10 + $0x8] sm:$0xff]  ;;  %v493_v61 = vld [vmem:[#allocation10 + $0x10] sm:$0xff]  ;;  %s2844_s24 = smov 16   ;;  %s2845_s11 = smov 24  }
  0x9b   :  { %v411_v17 = vcombine.low %v403_v59, %v410_v1  ;;  %v251_v23 = vrot.slane %v243_v8, %v3085_v25  ;;  %v260_v33 = vcombine.low %v183_v20, %v184_v22  ;;  %v491_v59 = vld [vmem:[#allocation10] sm:$0xff]  ;;  %v518_v62 = vrot.slane %v510_v16, %v3085_v25  ;;  %v494_v8 = vld [vmem:[#allocation10 + $0x18] sm:$0xff] }
  0x9c   :  { %2344 = vmatprep.mubr.msk.f32.mxu1 %vm277_vm0, %v394_v58  ;;  %v258_v31 = vrot.slane %v244_v18, %v3085_v25  ;;  %v261_v34 = vcombine.low %v185_v24, %v186_v30  ;;  %v525_v63 = vrot.slane %v511_v21, %v3085_v25  ;;  %v535_v1 = vrot.slane %v527_v32, %v3085_v25 }
  0x9d   :  { %2345 = vmatmul.mubr.msk.f32.vlgmr.msra.gmra.mrb[0].mxu1 %vm277_vm0, %v411_v17  ;;  %2462 = vmatpush3.bf16.msra.mxu0 %v2459_v54  ;;  %v268_v36 = vrot.slane %v260_v33, %v3085_v25  ;;  %v542_v2 = vrot.slane %v528_v42, %v3085_v25  ;;  %v2471_v3 = vpack.c.bf16 %v492_v60, %v491_v59  ;;  %vm1061_vm4 = vcmask 130048  }
  0x9e   :  { %v259_v35 = vcombine.low %v251_v23, %v258_v31  ;;  %v275_v37 = vrot.slane %v261_v34, %v3085_v25  ;;  %v2475_v9 = vpack.c.bf16 %v494_v8, %v493_v61  ;;  %v526_v10 = vcombine.low %v518_v62, %v525_v63 }
  0x9f   :  { %v543_v11 = vcombine.low %v535_v1, %v542_v2  ;;  %2472 = vmatprep.subr.bf16.mxu0 %v2471_v3  ;;  %v672_v24 = vld [vmem:[%s3659_s4 + $0x8] sm:$0xff]  ;;  %v671_v30 = vld [vmem:[%s3659_s4] sm:$0xff]  ;;  %vm1064_vm5 = vcmask 195584   ;;  %vm205_vm6 = vcmask 254976  }
  0xa0   :  { %2333 = vmatprep.mubr.msk.f32.mxu0 %vm277_vm0, %v259_v35  ;;  %v276_v38 = vcombine.low %v268_v36, %v275_v37  ;;  %v674_v36 = vld [vmem:[%s3659_s4 + $0x18] sm:$0xff] }
  0xa2   :  { %2334 = vmatmul.mubr.msk.f32.vlgmr.msra.gmra.mrb[0].mxu0 %vm277_vm0, %v276_v38  ;;  %v673_v38 = vld [vmem:[%s3659_s4 + $0x10] sm:$0xff] }
  0xa3   :  { %2474 = vmatpush3.bf16.msra.mxu0 %v2471_v3  ;;  %2355 = vmatprep.mubr.msk.f32.mxu0 %vm277_vm0, %v526_v10 }
  0xa4   :  { %2476 = vmatprep.subr.bf16.mxu0 %v2475_v9 }
  0xa7   :  { %2478 = vmatpush3.bf16.msra.mxu0 %v2475_v9  ;;  %v2213_v9 = vld [vmem:[#allocation11] ss:$0 sm:$0xff] }
  0xaa   :  { %2356 = vmatmul.mubr.msk.f32.vlgmr.msra.gmra.mrb[2].mxu0 %vm277_vm0, %v543_v11 }
 0x170   :  { %v2346_v40 = vpop.f32.mrb[0].mxu1 }
 0x171   :  { %v488_v41 = vadd.f32 %v2346_v40, %v2210_v39  ;;  %v482_v43 = vpop.f32.mrb[1].mxu1 }
 0x172   :  { %v483_v44 = vadd.f32 %v2210_v39, %v482_v43 }
 0x174   :  { %v2583_v45 = vpack.i.bf16 %v488_v41, %v483_v44  ;;  %v2479_v46 = vpack.c.bf16 %v488_v41, %v483_v44 }
 0x175   :  { %v2335_v49 = vpop.f32.mrb[0].mxu0 }
 0x176   :  { %2584 = vrot.lane.b32.xlu1 %v2583_v45, %s2841_s25  ;;  %2574 = vrot.lane.b32.xlu0 %v2583_v45, %s2842_s2  ;;  %v354_v53 = vadd.f32 %v2335_v49, %v2207_v48  ;;  %v348_v54 = vpop.f32.mrb[1].mxu0 }
 0x177   :  { %2481 = vmatprep.subr.msk.bf16.mxu1 %vm3189_vm2, %v2479_v46  ;;  %v349_v56 = vadd.f32 %v2207_v48, %v348_v54 }
 0x178   :  { %2484 = vmatpush3.bf16.xpose.msk.msra.mxu1 %vm3189_vm2, %v2479_v46  ;;  %v358_v57 = vmul.f32 0.35355338, %v354_v53  ;;  %v675_v46 = vld [vmem:[%s3659_s4 + $0x20] sm:$0xff] }
 0x179   :  { %v357_v58 = vmul.f32 0.35355338, %v349_v56 }
 0x17a   :  { %2579 = vrot.lane.b32.xlu0 %v2583_v45, %s2843_s23  ;;  %v676_v45 = vld [vmem:[%s3659_s4 + $0x28] sm:$0xff] }
 0x17b   :  { %625 = vrot.lane.b32.xlu1 %v357_v58, %s2842_s2  ;;  %2374 = vmatprep.mubr.msk.f32.mxu1 %vm679_vm1, %v357_v58 }
 0x17d   :  { %v2357_v8 = vpop.f32.mrb[2].mxu0 }
 0x17e   :  { %627 = vrot.lane.b32.xlu0 %v358_v57, %s2842_s2  ;;  %v620_v10 = vadd.f32 %v2357_v8, %v2213_v9  ;;  %v614_v11 = vpop.f32.mrb[3].mxu0 }
 0x17f   :  { %629 = vrot.lane.b32.xlu1 %v357_v58, %s2843_s23 }
 0x182   :  { %631 = vrot.lane.b32.xlu0 %v358_v57, %s2843_s23 }
 0x183   :  { %633 = vrot.lane.b32.xlu1 %v357_v58, %s2841_s25  ;;  %v677_v58 = vld [vmem:[%s3659_s4 + $0x30] sm:$0xff] }
 0x186   :  { %635 = vrot.lane.b32.xlu0 %v358_v57, %s2841_s25 }
 0x1e8   :  { %v2575_v13 = vpop.permute.xlu0 %2574  ;;  %v2585_v29 = vpop.permute.xlu1 %2584 }
 0x1e9   :  { %v2577_v14 = vunpack.i.h.bf16 %v2575_v13  ;;  %v2576_v16 = vunpack.i.l.bf16 %v2575_v13  ;;  %v2587_v42 = vunpack.i.h.bf16 %v2585_v29  ;;  %v2586_v12 = vunpack.i.l.bf16 %v2585_v29 }
 0x1ea   :  { %v615_v13 = vadd.f32 %v2213_v9, %v614_v11 }
 0x1eb   :  { %v2485_v21 = vpack.c.bf16 %v2577_v14, %v2576_v16  ;;  %v2497_v15 = vpack.c.bf16 %v2587_v42, %v2586_v12 }
 0x1ec   :  { %v2580_v26 = vpop.permute.xlu0 %2579  ;;  %v2593_v14 = vpack.i.bf16 %v620_v10, %v615_v13  ;;  %v2503_v16 = vpack.c.bf16 %v620_v10, %v615_v13 }
 0x1ed   :  { %v2582_v27 = vunpack.i.h.bf16 %v2580_v26  ;;  %v2581_v28 = vunpack.i.l.bf16 %v2580_v26  ;;  %2487 = vmatprep.subr.msk.bf16.mxu1 %vm3189_vm2, %v2485_v21  ;;  %v626_v17 = vpop.permute.xlu1 %625 }
 0x1ee   :  { %2490 = vmatpush3.bf16.xpose.msk.msra.mxu1 %vm3189_vm2, %v2485_v21  ;;  %2504 = vmatprep.subr.bf16.mxu0 %v2503_v16 }
 0x1ef   :  { %v2491_v32 = vpack.c.bf16 %v2582_v27, %v2581_v28  ;;  %2506 = vmatpush3.bf16.msra.mxu0 %v2503_v16 }
 0x1f0   :  { %v628_v18 = vpop.permute.xlu0 %627 }
 0x1f1   :  { %2493 = vmatprep.subr.msk.bf16.mxu1 %vm3189_vm2, %v2491_v32  ;;  %v630_v19 = vpop.permute.xlu1 %629 }
 0x1f4   :  { %v632_v20 = vpop.permute.xlu0 %631 }
 0x1f5   :  { %v634_v22 = vpop.permute.xlu1 %633 }
 0x1f6   :  { %2496 = vmatpush3.bf16.xpose.msk.msra.mxu1 %vm3189_vm2, %v2491_v32 }
 0x1f7   :  { %2499 = vmatprep.subr.msk.bf16.mxu1 %vm3189_vm2, %v2497_v15 }
 0x1f8   :  { %v636_v23 = vpop.permute.xlu0 %635 }
 0x1fe   :  { %2502 = vmatpush3.bf16.xpose.msk.msra.mxu1 %vm3189_vm2, %v2497_v15 }
 0x205   :  { %2375 = vmatmul.mubr.msk.f32.vlgmr.msra.gmra.mrb[2].mxu1 %vm679_vm1, %v358_v57  ;;  %v678_v57 = vld [vmem:[%s3659_s4 + $0x38] sm:$0xff] }
 0x206   :  { %2377 = vmatprep.mubr.msk.f32.mxu1 %vm679_vm1, %v626_v17 }
 0x209   :  { %2378 = vmatmul.mubr.msk.f32.gmra.mrb[4].mxu1 %vm679_vm1, %v628_v18 }
 0x20a   :  { %2380 = vmatprep.mubr.msk.f32.mxu1 %vm679_vm1, %v630_v19 }
 0x20d   :  { %2381 = vmatmul.mubr.msk.f32.gmra.mrb[6].mxu1 %vm679_vm1, %v632_v20 }
 0x20e   :  { %2383 = vmatprep.mubr.msk.f32.mxu1 %vm679_vm1, %v634_v22 }
 0x211   :  { %2384 = vmatmul.mubr.msk.f32.gmra.mrb[8].mxu1 %vm679_vm1, %v636_v23 }
 0x2d8   :  { %v2376_v31 = vpop.f32.mrb[2].mxu1 }
 0x2d9   :  { %v784_v33 = vadd.f32 %v2376_v31, %v672_v24  ;;  %v778_v34 = vpop.f32.mrb[3].mxu1 }
 0x2da   :  { %v779_v35 = vadd.f32 %v778_v34, %v671_v30 }
 0x2db   :  { %v821_v37 = vsel %vm817_vm3, %v784_v33, -inf }
 0x2dc   :  { %822 = vmax.xlane.f32.xlu0 %v821_v37  ;;  %v2379_v39 = vpop.f32.mrb[4].mxu1  ;;  %v818_v40 = vsel %vm817_vm3, %v779_v35, -inf }
 0x2dd   :  { %v794_v41 = vadd.f32 %v2379_v39, %v674_v36  ;;  %v788_v43 = vpop.f32.mrb[5].mxu1  ;;  %819 = vmax.xlane.f32.xlu1 %v818_v40 }
 0x2de   :  { %v789_v44 = vadd.f32 %v788_v43, %v673_v38 }
 0x2df   :  { %v827_v47 = vsel %vm817_vm3, %v794_v41, -inf }
 0x2e0   :  { %v2382_v48 = vpop.f32.mrb[6].mxu1  ;;  %v824_v49 = vsel %vm817_vm3, %v789_v44, -inf }
 0x2e1   :  { %v804_v53 = vadd.f32 %v2382_v48, %v676_v45  ;;  %v798_v54 = vpop.f32.mrb[7].mxu1  ;;  %825 = vmax.xlane.f32.xlu0 %v824_v49  ;;  %828 = vmax.xlane.f32.xlu1 %v827_v47 }
 0x2e2   :  { %v799_v56 = vadd.f32 %v798_v54, %v675_v46 }
 0x2e3   :  { %v833_v59 = vsel %vm817_vm3, %v804_v53, -inf }
 0x2e4   :  { %v2385_v60 = vpop.f32.mrb[8].mxu1  ;;  %v830_v61 = vsel %vm817_vm3, %v799_v56, -inf }
 0x2e5   :  { %v814_v62 = vadd.f32 %v2385_v60, %v678_v57  ;;  %v808_v63 = vpop.f32.mrb[9].mxu1  ;;  %831 = vmax.xlane.f32.xlu0 %v830_v61  ;;  %834 = vmax.xlane.f32.xlu1 %v833_v59 }
 0x2e6   :  { %v809_v1 = vadd.f32 %v808_v63, %v677_v58 }
 0x2e7   :  { %v839_v2 = vsel %vm817_vm3, %v814_v62, -inf }
 0x2e8   :  { %v836_v3 = vsel %vm817_vm3, %v809_v1, -inf }
 0x2e9   :  { %837 = vmax.xlane.f32.xlu0 %v836_v3  ;;  %840 = vmax.xlane.f32.xlu1 %v839_v2 }
 0x369   :  { %v823_v21 = vpop.xlane.xlu0 %822 }
 0x36a   :  { %v843_v26 = vsub.f32 %v784_v33, %v823_v21  ;;  %v820_v27 = vpop.xlane.xlu1 %819 }
 0x36b   :  { %v842_v28 = vsub.f32 %v779_v35, %v820_v27 }
 0x36c   :  { %v852_v29 = vmul.f32 1.442695, %v843_v26 }
 0x36d   :  { %v850_v32 = vmul.f32 1.442695, %v842_v28 }
 0x36e   :  { %2603 = vpow2.f32 %v852_v29  ;;  %v826_v42 = vpop.xlane.xlu0 %825  ;;  %v829_v12 = vpop.xlane.xlu1 %828 }
 0x36f   :  { %2605 = vpow2.f32 %v850_v32  ;;  %v844_v15 = vsub.f32 %v789_v44, %v826_v42  ;;  %v845_v17 = vsub.f32 %v794_v41, %v829_v12 }
 0x371   :  { %v854_v18 = vmul.f32 1.442695, %v844_v15  ;;  %v856_v19 = vmul.f32 1.442695, %v845_v17 }
 0x372   :  { %v832_v20 = vpop.xlane.xlu0 %831  ;;  %v835_v22 = vpop.xlane.xlu1 %834 }
 0x373   :  { %2607 = vpow2.f32 %v854_v18  ;;  %v846_v23 = vsub.f32 %v799_v56, %v832_v20  ;;  %v847_v24 = vsub.f32 %v804_v53, %v835_v22 }
 0x374   :  { %2609 = vpow2.f32 %v856_v19 }
 0x375   :  { %v858_v30 = vmul.f32 1.442695, %v846_v23  ;;  %v860_v31 = vmul.f32 1.442695, %v847_v24 }
 0x376   :  { %v838_v33 = vpop.xlane.xlu0 %837  ;;  %v841_v34 = vpop.xlane.xlu1 %840 }
 0x377   :  { %2611 = vpow2.f32 %v858_v30  ;;  %v848_v35 = vsub.f32 %v809_v1, %v838_v33  ;;  %v849_v36 = vsub.f32 %v814_v62, %v841_v34 }
 0x378   :  { %v3276_v37 = vpop.eup %2603  ;;  %2613 = vpow2.f32 %v860_v31 }
 0x379   :  { %v2606_v38 = vpop.eup %2605  ;;  %v862_v39 = vmul.f32 1.442695, %v848_v35  ;;  %v864_v40 = vmul.f32 1.442695, %v849_v36  ;;  %v869_v41 = vsel %vm817_vm3, %v3276_v37, 0.0 }
 0x37a   :  { %870 = vadd.xlane.f32.xlu1 %v869_v41  ;;  %v866_v43 = vsel %vm817_vm3, %v2606_v38, 0.0  ;;  %v1070_v41 = vld [vmem:[%s3635_s9 + $0x18] sm:$0xff] }
 0x37b   :  { %2615 = vpow2.f32 %v862_v39  ;;  %867 = vadd.xlane.f32.xlu0 %v866_v43 }
 0x37c   :  { %2617 = vpow2.f32 %v864_v40  ;;  %v1069_v40 = vld [vmem:[%s3635_s9 + $0x10] sm:$0xff] }
 0x37d   :  { %v2608_v44 = vpop.eup %2607  ;;  %v2523_v43 = vpack.c.bf16 %v1070_v41, %v1069_v40  ;;  %v2848_v40 = vmov 1414812756  }
 0x37e   :  { %v3281_v45 = vpop.eup %2609  ;;  %v872_v46 = vsel %vm817_vm3, %v2608_v44, 0.0  ;;  %v1283_v41 = vunpack.c.l.s4 %v2848_v40 }
 0x37f   :  { %873 = vadd.xlane.f32.xlu0 %v872_v46  ;;  %v875_v47 = vsel %vm817_vm3, %v3281_v45, 0.0 }
 0x380   :  { %876 = vadd.xlane.f32.xlu1 %v875_v47 }
 0x381   :  { %v2612_v48 = vpop.eup %2611 }
 0x382   :  { %v3286_v49 = vpop.eup %2613  ;;  %v878_v53 = vsel %vm817_vm3, %v2612_v48, 0.0 }
 0x383   :  { %879 = vadd.xlane.f32.xlu0 %v878_v53  ;;  %v881_v54 = vsel %vm817_vm3, %v3286_v49, 0.0 }
 0x384   :  { %882 = vadd.xlane.f32.xlu1 %v881_v54 }
 0x385   :  { %v2616_v56 = vpop.eup %2615 }
 0x386   :  { %v3291_v57 = vpop.eup %2617  ;;  %v884_v58 = vsel %vm817_vm3, %v2616_v56, 0.0 }
 0x387   :  { %885 = vadd.xlane.f32.xlu0 %v884_v58  ;;  %v887_v59 = vsel %vm817_vm3, %v3291_v57, 0.0 }
 0x388   :  { %888 = vadd.xlane.f32.xlu1 %v887_v59 }
 0x399   :  { %2594 = vrot.lane.b32.xlu1 %v2593_v14, %s2843_s23 }
 0x39d   :  { %2589 = vrot.lane.b32.xlu0 %v2593_v14, %s2842_s2  ;;  %2599 = vrot.lane.b32.xlu1 %v2593_v14, %s2841_s25 }
 0x407   :  { %v871_v60 = vpop.xlane.xlu1 %870 }
 0x408   :  { %v868_v61 = vpop.xlane.xlu0 %867 }
 0x409   :  { %2619 = vrcp.f32 %v868_v61 }
 0x40a   :  { %2621 = vrcp.f32 %v871_v60 }
 0x40c   :  { %v874_v62 = vpop.xlane.xlu0 %873 }
 0x40d   :  { %v877_v63 = vpop.xlane.xlu1 %876  ;;  %2623 = vrcp.f32 %v874_v62 }
 0x40e   :  { %2625 = vrcp.f32 %v877_v63 }
 0x410   :  { %v880_v1 = vpop.xlane.xlu0 %879 }
 0x411   :  { %v883_v2 = vpop.xlane.xlu1 %882  ;;  %2627 = vrcp.f32 %v880_v1 }
 0x412   :  { %2629 = vrcp.f32 %v883_v2 }
 0x413   :  { %v2620_v3 = vpop.eup %2619 }
 0x414   :  { %v886_v8 = vpop.xlane.xlu0 %885  ;;  %v898_v9 = vmul.f32 %v2620_v3, %v2606_v38  ;;  %v2622_v15 = vpop.eup %2621  ;;  %v1068_v38 = vld [vmem:[%s3635_s9 + $0x8] sm:$0xff] }
 0x415   :  { %v889_v10 = vpop.xlane.xlu1 %888  ;;  %2631 = vrcp.f32 %v886_v8  ;;  %v899_v18 = vmul.f32 %v2622_v15, %v3276_v37  ;;  %v1067_v37 = vld [vmem:[%s3635_s9] sm:$0xff] }
 0x416   :  { %2402 = vmatprep.mubr.msk.f32.mxu0 %vm817_vm3, %v898_v9  ;;  %2633 = vrcp.f32 %v889_v10  ;;  %v2519_v39 = vpack.c.bf16 %v1068_v38, %v1067_v37  ;;  %v2240_v9 = vld [vmem:[%s3636_s10] ss:$0 sm:$0xff]  ;;  %v2847_v38 = vmov 842150450  }
 0x417   :  { %v2624_v17 = vpop.eup %2623 }
 0x418   :  { %v2590_v11 = vpop.permute.xlu0 %2589  ;;  %v2626_v19 = vpop.eup %2625  ;;  %v900_v20 = vmul.f32 %v2624_v17, %v2608_v44 }
 0x419   :  { %v2592_v13 = vunpack.i.h.bf16 %v2590_v11  ;;  %v2591_v16 = vunpack.i.l.bf16 %v2590_v11  ;;  %v2595_v21 = vpop.permute.xlu1 %2594  ;;  %v901_v23 = vmul.f32 %v2626_v19, %v3281_v45 }
 0x41a   :  { %v2597_v26 = vunpack.i.h.bf16 %v2595_v21  ;;  %v2596_v14 = vunpack.i.l.bf16 %v2595_v21 }
 0x41b   :  { %v2507_v27 = vpack.c.bf16 %v2592_v13, %v2591_v16  ;;  %v2628_v22 = vpop.eup %2627 }
 0x41c   :  { %v2511_v28 = vpack.c.bf16 %v2597_v26, %v2596_v14  ;;  %v2630_v24 = vpop.eup %2629  ;;  %v902_v30 = vmul.f32 %v2628_v22, %v2612_v48 }
 0x41d   :  { %v2600_v29 = vpop.permute.xlu1 %2599  ;;  %2508 = vmatprep.subr.bf16.mxu0 %v2507_v27  ;;  %v903_v33 = vmul.f32 %v2630_v24, %v3286_v49 }
 0x41e   :  { %v2602_v32 = vunpack.i.h.bf16 %v2600_v29  ;;  %v2601_v42 = vunpack.i.l.bf16 %v2600_v29  ;;  %2510 = vmatpush3.bf16.msra.mxu0 %v2507_v27 }
 0x41f   :  { %2512 = vmatprep.subr.bf16.mxu0 %v2511_v28  ;;  %v2632_v31 = vpop.eup %2631 }
 0x420   :  { %v2515_v12 = vpack.c.bf16 %v2602_v32, %v2601_v42  ;;  %v2634_v34 = vpop.eup %2633  ;;  %v904_v35 = vmul.f32 %v2632_v31, %v2616_v56 }
 0x421   :  { %v905_v36 = vmul.f32 %v2634_v34, %v3291_v57 }
 0x422   :  { %2514 = vmatpush3.bf16.msra.mxu0 %v2511_v28 }
 0x423   :  { %2516 = vmatprep.subr.bf16.mxu0 %v2515_v12 }
 0x426   :  { %2518 = vmatpush3.bf16.msra.mxu0 %v2515_v12 }
 0x427   :  { %2520 = vmatprep.subr.bf16.mxu0 %v2519_v39 }
 0x429   :  { %2403 = vmatmul.mubr.msk.f32.vlgmr.msra.gmra.mrb[4].mxu0 %vm817_vm3, %v899_v18 }
 0x42a   :  { %2405 = vmatprep.mubr.msk.f32.mxu0 %vm817_vm3, %v900_v20  ;;  %2522 = vmatpush3.bf16.msra.mxu0 %v2519_v39  ;;  %v1276_v39 = vunpack.c.l.s4 %v2847_v38  ;;  %v1547_v38 = vld [vmem:[#allocation13 + $0x8] sm:$0xff] }
 0x42b   :  { %2524 = vmatprep.subr.bf16.mxu0 %v2523_v43 }
 0x42d   :  { %2406 = vmatmul.mubr.msk.f32.gmra.mrb[6].mxu0 %vm817_vm3, %v901_v23 }
 0x42e   :  { %2408 = vmatprep.mubr.msk.f32.mxu0 %vm817_vm3, %v902_v30  ;;  %2526 = vmatpush3.bf16.msra.mxu0 %v2523_v43  ;;  %v2849_v43 = vmov 1987475062  }
 0x431   :  { %2409 = vmatmul.mubr.msk.f32.gmra.mrb[8].mxu0 %vm817_vm3, %v903_v33 }
 0x432   :  { %2411 = vmatprep.mubr.msk.f32.mxu0 %vm817_vm3, %v904_v35 }
 0x435   :  { %2412 = vmatmul.mubr.msk.f32.gmra.mrb[10].mxu0 %vm817_vm3, %v905_v36  ;;  %v2846_v36 = vmov 269488144  }
 0x436   :  { %v1269_v37 = vunpack.c.l.s4 %v2846_v36 }
 0x4fc   :  { %v2404_v44 = vpop.f32.mrb[4].mxu0 }
 0x4fd   :  { %v996_v45 = vpop.f32.mrb[5].mxu0 }
 0x500   :  { %v2407_v46 = vpop.f32.mrb[6].mxu0 }
 0x501   :  { %1039 = vrot.lane.b32.xlu1 %v2407_v46, %s2837_s26  ;;  %v1006_v47 = vpop.f32.mrb[7].mxu0  ;;  %v1277_v46 = vunpack.c.0.s8 %v1276_v39  ;;  %v1548_v39 = vld [vmem:[#allocation13 + $0x10] sm:$0xff] }
 0x502   :  { %1037 = vrot.lane.b32.xlu0 %v1006_v47, %s2837_s26  ;;  %v1284_v47 = vunpack.c.0.s8 %v1283_v41  ;;  %v1549_v41 = vld [vmem:[#allocation13 + $0x18] sm:$0xff] }
 0x504   :  { %v2410_v48 = vpop.f32.mrb[8].mxu0 }
 0x505   :  { %1047 = vrot.lane.b32.xlu1 %v2410_v48, %s2844_s24  ;;  %v1016_v49 = vpop.f32.mrb[9].mxu0 }
 0x506   :  { %1045 = vrot.lane.b32.xlu0 %v1016_v49, %s2844_s24 }
 0x508   :  { %v2413_v53 = vpop.f32.mrb[10].mxu0 }
 0x509   :  { %1055 = vrot.lane.b32.xlu1 %v2413_v53, %s2845_s11  ;;  %v1026_v54 = vpop.f32.mrb[11].mxu0  ;;  %v3378_v53 = vsub.s32 %v1277_v46, %v3054_v7  ;;  %v1682_v46 = vld [vmem:[%s3639_s13 + $0x10] sm:$0xff] }
 0x50a   :  { %1053 = vrot.lane.b32.xlu0 %v1026_v54, %s2845_s11  ;;  %v3381_v54 = vsub.s32 %v1284_v47, %v3054_v7 }
 0x573   :  { %v1040_v56 = vpop.permute.xlu1 %1039 }
 0x574   :  { %v1038_v57 = vpop.permute.xlu0 %1037  ;;  %v1060_v62 = vsel %vm679_vm1, %v2404_v44, %v1040_v56  ;;  %v1290_v44 = vunpack.c.l.s4 %v2849_v43  ;;  %v2531_v43 = vpack.c.bf16 %v1549_v41, %v1548_v39 }
 0x575   :  { %v1059_v60 = vsel %vm679_vm1, %v996_v45, %v1038_v57  ;;  %v1270_v45 = vunpack.c.0.s8 %v1269_v37  ;;  %v1546_v37 = vld [vmem:[#allocation13] sm:$0xff] }
 0x576   :  { %v1291_v48 = vunpack.c.0.s8 %v1290_v44  ;;  %v2527_v40 = vpack.c.bf16 %v1547_v38, %v1546_v37  ;;  %v1680_v44 = vld [vmem:[%s3639_s13] sm:$0xff] }
 0x577   :  { %v1048_v58 = vpop.permute.xlu1 %1047  ;;  %v3375_v49 = vsub.s32 %v1270_v45, %v3054_v7  ;;  %v1681_v45 = vld [vmem:[%s3639_s13 + $0x8] sm:$0xff] }
 0x578   :  { %v1046_v59 = vpop.permute.xlu0 %1045  ;;  %v1063_v2 = vsel %vm1061_vm4, %v1060_v62, %v1048_v58  ;;  %v3384_v56 = vsub.s32 %v1291_v48, %v3054_v7  ;;  %2528 = vmatprep.subr.bf16.mxu0 %v2527_v40  ;;  %v2535_v47 = vpack.c.bf16 %v1681_v45, %v1680_v44  ;;  %v1683_v48 = vld [vmem:[%s3639_s13 + $0x18] sm:$0xff] }
 0x579   :  { %v1062_v63 = vsel %vm1061_vm4, %v1059_v60, %v1046_v59 }
 0x57a   :  { %2536 = vmatprep.subr.bf16.mxu1 %v2535_v47 }
 0x57b   :  { %v1056_v61 = vpop.permute.xlu1 %1055  ;;  %2538 = vmatpush3.bf16.msra.mxu1 %v2535_v47 }
 0x57c   :  { %v1054_v1 = vpop.permute.xlu0 %1053  ;;  %v1066_v8 = vsel %vm1064_vm5, %v1063_v2, %v1056_v61 }
 0x57d   :  { %v1065_v3 = vsel %vm1064_vm5, %v1062_v63, %v1054_v1 }
 0x57e   :  { %2422 = vmatprep.mubr.msk.f32.mxu0 %vm277_vm0, %v1065_v3 }
 0x57f   :  { %2423 = vmatmul.mubr.msk.f32.vlgmr.msra.gmra.mrb[12].mxu0 %vm277_vm0, %v1066_v8 }
 0x580   :  { %2530 = vmatpush3.bf16.msra.mxu0 %v2527_v40 }
 0x581   :  { %2532 = vmatprep.subr.bf16.mxu0 %v2531_v43 }
 0x584   :  { %2534 = vmatpush3.bf16.msra.mxu0 %v2531_v43 }
 0x652   :  { %v2424_v10 = vpop.f32.mrb[12].mxu0 }
 0x653   :  { %v1156_v11 = vadd.f32 %v2424_v10, %v2240_v9  ;;  %v1150_v13 = vpop.f32.mrb[13].mxu0 }
 0x654   :  { %v1151_v16 = vadd.f32 %v2240_v9, %v1150_v13 }
 0x655   :  { %v1178_v21 = vcombine.high %v1156_v11, %v1156_v11  ;;  %v1185_v26 = vrot.slane %v1156_v11, %v3085_v25 }
 0x656   :  { %v1161_v14 = vcombine.high %v1151_v16, %v1151_v16  ;;  %v1168_v27 = vrot.slane %v1151_v16, %v3085_v25 }
 0x657   :  { %v1192_v28 = vrot.slane %v1178_v21, %v3085_v25  ;;  %v1193_v29 = vcombine.high %v1185_v26, %v1185_v26  ;;  %v3337_v15 = vadd.f32 %v1185_v26, %v3152_v0 }
 0x658   :  { %v1175_v32 = vrot.slane %v1161_v14, %v3085_v25  ;;  %v1176_v42 = vcombine.high %v1168_v27, %v1168_v27  ;;  %v3343_v19 = vadd.f32 %v1168_v27, %v3129_v50 }
 0x659   :  { %v1194_v12 = vcombine.high %v1192_v28, %v1192_v28  ;;  %v3340_v17 = vadd.f32 %v1193_v29, %v3157_v4  ;;  %v3349_v22 = vadd.f32 %v1192_v28, %v3159_v5 }
 0x65a   :  { %v1177_v18 = vcombine.high %v1175_v32, %v1175_v32  ;;  %v3346_v20 = vadd.f32 %v1176_v42, %v3131_v51  ;;  %v3357_v24 = vadd.f32 %v1175_v32, %v3133_v52 }
 0x65b   :  { %v3352_v23 = vadd.f32 %v1194_v12, %v3161_v6  ;;  %v1238_v0 = vcombine.low %v3337_v15, %v3340_v17 }
 0x65c   :  { %v3360_v4 = vadd.f32 %v1177_v18, %v3135_v55  ;;  %v1221_v50 = vcombine.low %v3343_v19, %v3346_v20 }
 0x65d   :  { %v1239_v51 = vcombine.low %v3349_v22, %v3352_v23  ;;  %v1246_v6 = vrot.slane %v1238_v0, %v3085_v25 }
 0x65e   :  { %v1222_v5 = vcombine.low %v3357_v24, %v3360_v4  ;;  %v1229_v31 = vrot.slane %v1221_v50, %v3085_v25 }
 0x65f   :  { %v1253_v30 = vrot.slane %v1239_v51, %v3085_v25 }
 0x660   :  { %v1236_v52 = vrot.slane %v1222_v5, %v3085_v25 }
 0x661   :  { %v1254_v33 = vcombine.low %v1246_v6, %v1253_v30 }
 0x662   :  { %v1237_v55 = vcombine.low %v1229_v31, %v1236_v52 }
 0x663   :  { %v1260_v34 = vsel %vm277_vm0, %v1254_v33, 0.0 }
 0x664   :  { %1261 = vadd.xlane.f32.xlu1 %v1260_v34  ;;  %v1257_v35 = vsel %vm277_vm0, %v1237_v55, 0.0 }
 0x665   :  { %1258 = vadd.xlane.f32.xlu0 %v1257_v35 }
 0x6f1   :  { %v1262_v57 = vpop.xlane.xlu1 %1261 }
 0x6f2   :  { %v1265_v58 = vmul.f32 0.03125, %v1262_v57  ;;  %v1259_v59 = vpop.xlane.xlu0 %1258  ;;  %v2539_v57 = vpack.c.bf16 %v1683_v48, %v1682_v46 }
 0x6f3   :  { %v1264_v60 = vmul.f32 0.03125, %v1259_v59  ;;  %v1685_v59 = vld [vmem:[%s3639_s13 + $0x28] sm:$0xff] }
 0x6f4   :  { %v1302_v61 = vrot.slane %v1265_v58, %v3375_v49  ;;  %v1309_v62 = vrot.slane %v1265_v58, %v3378_v53  ;;  %v1316_v63 = vrot.slane %v1265_v58, %v3381_v54  ;;  %v1323_v1 = vrot.slane %v1265_v58, %v3384_v56  ;;  %v1684_v58 = vld [vmem:[%s3639_s13 + $0x20] sm:$0xff]  ;;  %2540 = vmatprep.subr.bf16.mxu1 %v2539_v57 }
 0x6f5   :  { %v1274_v2 = vrot.slane %v1264_v60, %v3375_v49  ;;  %v1281_v3 = vrot.slane %v1264_v60, %v3378_v53  ;;  %v1288_v8 = vrot.slane %v1264_v60, %v3381_v54  ;;  %v1295_v7 = vrot.slane %v1264_v60, %v3384_v56  ;;  %2542 = vmatpush3.bf16.msra.mxu1 %v2539_v57 }
 0x6f6   :  { %v3395_v9 = vsub.f32 %v3337_v15, %v1302_v61  ;;  %v3398_v10 = vsub.f32 %v3340_v17, %v1309_v62  ;;  %v3401_v11 = vsub.f32 %v3349_v22, %v1316_v63  ;;  %v3404_v13 = vsub.f32 %v3352_v23, %v1323_v1 }
 0x6f7   :  { %v3407_v16 = vsub.f32 %v3343_v19, %v1274_v2  ;;  %v3410_v21 = vsub.f32 %v3346_v20, %v1281_v3  ;;  %v3413_v26 = vsub.f32 %v3357_v24, %v1288_v8  ;;  %v3416_v14 = vsub.f32 %v3360_v4, %v1295_v7  ;;  %v2243_v3 = vld [vmem:[%s3641_s15] ss:$0 sm:$0xff] }
 0x6f8   :  { %v1344_v27 = vmul.f32 %v3395_v9, %v3395_v9  ;;  %v1345_v28 = vmul.f32 %v3398_v10, %v3398_v10  ;;  %v1346_v29 = vmul.f32 %v3401_v11, %v3401_v11  ;;  %v1347_v32 = vmul.f32 %v3404_v13, %v3404_v13  ;;  %v2244_v7 = vld [vmem:[%s3642_s16] ss:$0 sm:$0xff] }
 0x6f9   :  { %v1340_v42 = vmul.f32 %v3407_v16, %v3407_v16  ;;  %v1341_v12 = vmul.f32 %v3410_v21, %v3410_v21  ;;  %v1342_v18 = vmul.f32 %v3413_v26, %v3413_v26  ;;  %v1343_v0 = vmul.f32 %v3416_v14, %v3416_v14 }
 0x6fa   :  { %v1373_v50 = vcombine.low %v1344_v27, %v1345_v28  ;;  %v1374_v51 = vcombine.low %v1346_v29, %v1347_v32  ;;  %v2543_v60 = vpack.c.bf16 %v1685_v59, %v1684_v58  ;;  %v1483_v27 = vcombine.high %v2243_v3, %v2243_v3 }
 0x6fb   :  { %v1356_v5 = vcombine.low %v1340_v42, %v1341_v12  ;;  %v1357_v6 = vcombine.low %v1342_v18, %v1343_v0  ;;  %v1490_v28 = vrot.slane %v2243_v3, %v3085_v25  ;;  %v1517_v29 = vcombine.high %v2244_v7, %v2244_v7 }
 0x6fc   :  { %v1381_v52 = vrot.slane %v1373_v50, %v3085_v25  ;;  %v1388_v33 = vrot.slane %v1374_v51, %v3085_v25  ;;  %2544 = vmatprep.subr.bf16.mxu1 %v2543_v60  ;;  %v1497_v32 = vrot.slane %v1483_v27, %v3085_v25  ;;  %v1524_v42 = vrot.slane %v2244_v7, %v3085_v25 }
 0x6fd   :  { %v1364_v30 = vrot.slane %v1356_v5, %v3085_v25  ;;  %v1371_v31 = vrot.slane %v1357_v6, %v3085_v25  ;;  %2546 = vmatpush3.bf16.msra.mxu1 %v2543_v60  ;;  %v1498_v18 = vcombine.high %v1490_v28, %v1490_v28  ;;  %v1531_v0 = vrot.slane %v1517_v29, %v3085_v25 }
 0x6fe   :  { %v1389_v35 = vcombine.low %v1381_v52, %v1388_v33 }
 0x6ff   :  { %v1372_v55 = vcombine.low %v1364_v30, %v1371_v31  ;;  %v1499_v30 = vcombine.high %v1497_v32, %v1497_v32  ;;  %v1532_v31 = vcombine.high %v1524_v42, %v1524_v42 }
 0x700   :  { %v1395_v36 = vsel %vm277_vm0, %v1389_v35, 0.0 }
 0x701   :  { %v1392_v34 = vsel %vm277_vm0, %v1372_v55, 0.0 }
 0x702   :  { %1393 = vadd.xlane.f32.xlu0 %v1392_v34 }
 0x706   :  { %1396 = vadd.xlane.f32.xlu0 %v1395_v36  ;;  %v1533_v36 = vcombine.high %v1531_v0, %v1531_v0 }
 0x78f   :  { %v1394_v61 = vpop.xlane.xlu0 %1393 }
 0x790   :  { %v1398_v62 = vmul.f32 0.03125, %v1394_v61 }
 0x792   :  { %v1400_v63 = vadd.f32 1e-05, %v1398_v62 }
 0x793   :  { %v1397_v1 = vpop.xlane.xlu0 %1396 }
 0x794   :  { %2635 = vrsqrt.f32 %v1400_v63  ;;  %v1399_v2 = vmul.f32 0.03125, %v1397_v1 }
 0x796   :  { %v1401_v8 = vadd.f32 1e-05, %v1399_v2 }
 0x798   :  { %2637 = vrsqrt.f32 %v1401_v8 }
 0x79e   :  { %v2636_v12 = vpop.eup %2635 }
 0x79f   :  { %v1412_v50 = vrot.slane %v2636_v12, %v3375_v49  ;;  %v1419_v51 = vrot.slane %v2636_v12, %v3378_v53  ;;  %v1426_v5 = vrot.slane %v2636_v12, %v3381_v54  ;;  %v1433_v6 = vrot.slane %v2636_v12, %v3384_v56 }
 0x7a1   :  { %v1470_v52 = vmul.f32 %v1412_v50, %v3407_v16  ;;  %v1471_v33 = vmul.f32 %v1419_v51, %v3410_v21  ;;  %v1472_v55 = vmul.f32 %v1426_v5, %v3413_v26  ;;  %v1473_v34 = vmul.f32 %v1433_v6, %v3416_v14 }
 0x7a2   :  { %v2638_v35 = vpop.eup %2637 }
 0x7a3   :  { %v1447_v37 = vrot.slane %v2638_v35, %v3378_v53  ;;  %v1461_v38 = vrot.slane %v2638_v35, %v3384_v56  ;;  %v1504_v39 = vmul.f32 %v1490_v28, %v1470_v52  ;;  %v1505_v40 = vmul.f32 %v1498_v18, %v1471_v33 }
 0x7a4   :  { %v1506_v41 = vmul.f32 %v1497_v32, %v1472_v55  ;;  %v1507_v43 = vmul.f32 %v1499_v30, %v1473_v34  ;;  %v1440_v44 = vrot.slane %v2638_v35, %v3375_v49  ;;  %v1454_v16 = vrot.slane %v2638_v35, %v3381_v54 }
 0x7a5   :  { %v1475_v21 = vmul.f32 %v1447_v37, %v3398_v10  ;;  %v1477_v26 = vmul.f32 %v1461_v38, %v3404_v13  ;;  %v1538_v45 = vadd.f32 %v1524_v42, %v1504_v39  ;;  %v1539_v14 = vadd.f32 %v1532_v31, %v1505_v40 }
 0x7a6   :  { %v1540_v46 = vadd.f32 %v1531_v0, %v1506_v41  ;;  %v1541_v47 = vadd.f32 %v1533_v36, %v1507_v43  ;;  %v1474_v48 = vmul.f32 %v1440_v44, %v3395_v9  ;;  %v1476_v57 = vmul.f32 %v1454_v16, %v3401_v11 }
 0x7a7   :  { %v1509_v58 = vmul.f32 %v1498_v18, %v1475_v21  ;;  %v1511_v59 = vmul.f32 %v1499_v30, %v1477_v26  ;;  %v1565_v60 = vcombine.low %v1538_v45, %v1539_v14  ;;  %v2245_v18 = vld [vmem:[%s3638_s12] ss:$0 sm:$0xff] }
 0x7a8   :  { %v1566_v61 = vcombine.low %v1540_v46, %v1541_v47  ;;  %v1508_v62 = vmul.f32 %v1490_v28, %v1474_v48  ;;  %v1510_v63 = vmul.f32 %v1497_v32, %v1476_v57  ;;  %v1686_v28 = vld [vmem:[%s3639_s13 + $0x30] sm:$0xff]  ;;  %v1687_v32 = vld [vmem:[%s3639_s13 + $0x38] sm:$0xff] }
 0x7a9   :  { %v1543_v1 = vadd.f32 %v1532_v31, %v1509_v58  ;;  %v1545_v2 = vadd.f32 %v1533_v36, %v1511_v59  ;;  %v1573_v10 = vrot.slane %v1565_v60, %v3085_v25  ;;  %v2248_v31 = vld [vmem:[%s3640_s14] ss:$0 sm:$0xff] }
 0x7aa   :  { %v1580_v13 = vrot.slane %v1566_v61, %v3085_v25  ;;  %v1542_v3 = vadd.f32 %v1524_v42, %v1508_v62  ;;  %v1544_v8 = vadd.f32 %v1531_v0, %v1510_v63  ;;  %v2547_v42 = vpack.c.bf16 %v1687_v32, %v1686_v28 }
 0x7ac   :  { %v1581_v7 = vcombine.low %v1573_v10, %v1580_v13  ;;  %v1582_v27 = vcombine.low %v1542_v3, %v1543_v1  ;;  %v1583_v29 = vcombine.low %v1544_v8, %v1545_v2  ;;  %2548 = vmatprep.subr.bf16.mxu1 %v2547_v42 }
 0x7ad   :  { %2550 = vmatpush3.bf16.msra.mxu1 %v2547_v42 }
 0x7ae   :  { %2433 = vmatprep.mubr.msk.f32.mxu0 %vm277_vm0, %v1581_v7  ;;  %v1590_v9 = vrot.slane %v1582_v27, %v3085_v25  ;;  %v1597_v11 = vrot.slane %v1583_v29, %v3085_v25 }
 0x7b0   :  { %v1598_v12 = vcombine.low %v1590_v9, %v1597_v11 }
 0x7b2   :  { %2434 = vmatmul.mubr.msk.f32.vlgmr.msra.gmra.mrb[14].mxu0 %vm277_vm0, %v1598_v12 }
 0x885   :  { %v2435_v0 = vpop.f32.mrb[14].mxu0 }
 0x886   :  { %v1675_v50 = vadd.f32 %v2435_v0, %v2245_v18  ;;  %v1669_v51 = vpop.f32.mrb[15].mxu0 }
 0x887   :  { %v1670_v5 = vadd.f32 %v2245_v18, %v1669_v51 }
 0x888   :  { %v1679_v30 = vmax.f32 %v1675_v50, 0.0 }
 0x889   :  { %v1678_v6 = vmax.f32 %v1670_v5, 0.0 }
 0x88b   :  { %2452 = vmatprep.mubr.msk.f32.mxu1 %vm817_vm3, %v1678_v6 }
 0x88c   :  { %2453 = vmatmul.mubr.msk.f32.vlgmr.msra.gmra.mrb[10].mxu1 %vm817_vm3, %v1679_v30 }
 0x95f   :  { %v2454_v52 = vpop.f32.mrb[10].mxu1 }
 0x960   :  { %v1773_v33 = vadd.f32 %v2454_v52, %v2248_v31  ;;  %v1767_v55 = vpop.f32.mrb[11].mxu1 }
 0x961   :  { %v1768_v34 = vadd.f32 %v2248_v31, %v1767_v55 }
 0x962   :  { %v1795_v35 = vcombine.high %v1773_v33, %v1773_v33  ;;  %v1802_v36 = vrot.slane %v1773_v33, %v3085_v25 }
 0x963   :  { %v1778_v37 = vcombine.high %v1768_v34, %v1768_v34  ;;  %v1785_v38 = vrot.slane %v1768_v34, %v3085_v25 }
 0x964   :  { %v1809_v39 = vrot.slane %v1795_v35, %v3085_v25  ;;  %v1810_v40 = vcombine.high %v1802_v36, %v1802_v36  ;;  %v1824_v16 = vadd.f32 %v1802_v36, %v3337_v15 }
 0x965   :  { %v1792_v41 = vrot.slane %v1778_v37, %v3085_v25  ;;  %v1793_v43 = vcombine.high %v1785_v38, %v1785_v38  ;;  %v1820_v45 = vadd.f32 %v1785_v38, %v3343_v19 }
 0x966   :  { %v1811_v44 = vcombine.high %v1809_v39, %v1809_v39  ;;  %v1825_v21 = vadd.f32 %v1810_v40, %v3340_v17  ;;  %v1826_v46 = vadd.f32 %v1809_v39, %v3349_v22 }
 0x967   :  { %v1794_v26 = vcombine.high %v1792_v41, %v1792_v41  ;;  %v1821_v14 = vadd.f32 %v1793_v43, %v3346_v20  ;;  %v1822_v57 = vadd.f32 %v1792_v41, %v3357_v24 }
 0x968   :  { %v1827_v47 = vadd.f32 %v1811_v44, %v3352_v23  ;;  %v1855_v48 = vcombine.low %v1824_v16, %v1825_v21 }
 0x969   :  { %v1823_v58 = vadd.f32 %v1794_v26, %v3360_v4  ;;  %v1838_v59 = vcombine.low %v1820_v45, %v1821_v14  ;;  %v204_v26 = vld [vmem:[#allocation2] sm:$0x3] }
 0x96a   :  { %v1856_v60 = vcombine.low %v1826_v46, %v1827_v47  ;;  %v1863_v15 = vrot.slane %v1855_v48, %v3085_v25  ;;  %206 = vst.msk [vmem:[#allocation14] sm:$0x3] %vm205_vm6, %v204_v26  ;;  %v211_v48 = vld [vmem:[#allocation2 + $0x1a] sm:$0x3] }
 0x96b   :  { %v1839_v61 = vcombine.low %v1822_v57, %v1823_v58  ;;  %v1846_v19 = vrot.slane %v1838_v59, %v3085_v25  ;;  %v214_v59 = vld [vmem:[#allocation2 + $0x20] sm:$0x3]  ;;  %220 = vst.msk [vmem:[#allocation14 + $0x1a] sm:$0x3] %vm205_vm6, %v211_v48 }
 0x96c   :  { %v1870_v17 = vrot.slane %v1856_v60, %v3085_v25  ;;  %223 = vst.msk [vmem:[#allocation14 + $0x20] sm:$0x3] %vm205_vm6, %v214_v59 }
 0x96d   :  { %v1853_v20 = vrot.slane %v1839_v61, %v3085_v25 }
 0x96e   :  { %v1871_v62 = vcombine.low %v1863_v15, %v1870_v17 }
 0x96f   :  { %v1854_v22 = vcombine.low %v1846_v19, %v1853_v20  ;;  %v2251_v20 = vld [vmem:[%s3643_s17] ss:$0 sm:$0xff]  ;;  %s2850_s17 = smov [#allocation14]  }
 0x970   :  { %v1877_v23 = vsel %vm277_vm0, %v1871_v62, 0.0  ;;  %v2252_v62 = vld [vmem:[%s3644_s18] ss:$0 sm:$0xff]  ;;  %s2176_s18 = sshll.u32 %s2850_s17, 4  ;;  %s2177_s18 = int_to_ptr.vmem [resolvable:$true] %s2176_s18 }
 0x971   :  { %1878 = vadd.xlane.f32.xlu0 %v1877_v23  ;;  %v1874_v24 = vsel %vm277_vm0, %v1854_v22, 0.0  ;;  %v2099_v23 = vcombine.high %v2251_v20, %v2251_v20  ;;  %s2797_s20 = scalar_lea.vmem %s2177_s18, 544  ;;  %p2802_p1 = scmp.lt.s32.totalorder %s2177_s18, %s2177_s18 }
 0x972   :  { %1875 = vadd.xlane.f32.xlu1 %v1874_v24  ;;  %v2133_v24 = vcombine.high %v2252_v62, %v2252_v62  ;;  %p2798_p0 = scmp.ne.s32.totalorder %s2177_s18, %s2797_s20  ;;  %p2803_p2 = scmp.lt.s32.totalorder %s2797_s20, %s2797_s20 }
 0x974   :  { %p2804_p3 = por %p2803_p2, %p2802_p1 }
 0x976   :  { %p2805_p4 = pnand %p2804_p3, %p2798_p0 }
 0x9fe   :  { %v1879_v4 = vpop.xlane.xlu0 %1878 }
 0x9ff   :  { %v1881_v63 = vmul.f32 0.03125, %v1879_v4  ;;  %v1876_v1 = vpop.xlane.xlu1 %1875  ;;  %v2106_v4 = vrot.slane %v2251_v20, %v3085_v25 }
 0xa00   :  { %v1880_v2 = vmul.f32 0.03125, %v1876_v1  ;;  %v2140_v1 = vrot.slane %v2252_v62, %v3085_v25 }
 0xa01   :  { %v1918_v10 = vrot.slane %v1881_v63, %v3375_v49  ;;  %v1925_v13 = vrot.slane %v1881_v63, %v3378_v53  ;;  %v1932_v3 = vrot.slane %v1881_v63, %v3381_v54  ;;  %v1939_v8 = vrot.slane %v1881_v63, %v3384_v56 }
 0xa02   :  { %v1890_v7 = vrot.slane %v1880_v2, %v3375_v49  ;;  %v1897_v27 = vrot.slane %v1880_v2, %v3378_v53  ;;  %v1904_v29 = vrot.slane %v1880_v2, %v3381_v54  ;;  %v1911_v9 = vrot.slane %v1880_v2, %v3384_v56 }
 0xa03   :  { %v3530_v11 = vsub.f32 %v1824_v16, %v1918_v10  ;;  %v3532_v12 = vsub.f32 %v1825_v21, %v1925_v13  ;;  %v3534_v28 = vsub.f32 %v1826_v46, %v1932_v3  ;;  %v3536_v32 = vsub.f32 %v1827_v47, %v1939_v8  ;;  %v209_v46 = vld [vmem:[#allocation2 + $0x16] sm:$0x3]  ;;  %v210_v47 = vld [vmem:[#allocation2 + $0x18] sm:$0x3] }
 0xa04   :  { %v3538_v42 = vsub.f32 %v1820_v45, %v1890_v7  ;;  %v3540_v18 = vsub.f32 %v1821_v14, %v1897_v27  ;;  %v3542_v0 = vsub.f32 %v1822_v57, %v1904_v29  ;;  %v3544_v50 = vsub.f32 %v1823_v58, %v1911_v9  ;;  %v207_v45 = vld [vmem:[#allocation2 + $0x12] sm:$0x3]  ;;  %v208_v14 = vld [vmem:[#allocation2 + $0x14] sm:$0x3]  ;;  %v212_v57 = vld [vmem:[#allocation2 + $0x1c] sm:$0x3] }
 0xa05   :  { %v1960_v51 = vmul.f32 %v3530_v11, %v3530_v11  ;;  %v1961_v5 = vmul.f32 %v3532_v12, %v3532_v12  ;;  %v1962_v6 = vmul.f32 %v3534_v28, %v3534_v28  ;;  %v1963_v30 = vmul.f32 %v3536_v32, %v3536_v32  ;;  %216 = vst.msk [vmem:[#allocation14 + $0x12] sm:$0x3] %vm205_vm6, %v207_v45  ;;  %v213_v58 = vld [vmem:[#allocation2 + $0x1e] sm:$0x3] }
 0xa06   :  { %v1956_v31 = vmul.f32 %v3538_v42, %v3538_v42  ;;  %v1957_v52 = vmul.f32 %v3540_v18, %v3540_v18  ;;  %v1958_v33 = vmul.f32 %v3542_v0, %v3542_v0  ;;  %v1959_v55 = vmul.f32 %v3544_v50, %v3544_v50  ;;  %217 = vst.msk [vmem:[#allocation14 + $0x14] sm:$0x3] %vm205_vm6, %v208_v14 }
 0xa07   :  { %v1989_v34 = vcombine.low %v1960_v51, %v1961_v5  ;;  %v1990_v35 = vcombine.low %v1962_v6, %v1963_v30  ;;  %218 = vst.msk [vmem:[#allocation14 + $0x16] sm:$0x3] %vm205_vm6, %v209_v46  ;;  %219 = vst.msk [vmem:[#allocation14 + $0x18] sm:$0x3] %vm205_vm6, %v210_v47  ;;  %v2113_v63 = vrot.slane %v2099_v23, %v3085_v25 }
 0xa08   :  { %v1972_v36 = vcombine.low %v1956_v31, %v1957_v52  ;;  %v1973_v37 = vcombine.low %v1958_v33, %v1959_v55  ;;  %221 = vst.msk [vmem:[#allocation14 + $0x1c] sm:$0x3] %vm205_vm6, %v212_v57  ;;  %222 = vst.msk [vmem:[#allocation14 + $0x1e] sm:$0x3] %vm205_vm6, %v213_v58  ;;  %v2147_v2 = vrot.slane %v2133_v24, %v3085_v25 }
 0xa09   :  { %v1997_v38 = vrot.slane %v1989_v34, %v3085_v25  ;;  %v2004_v39 = vrot.slane %v1990_v35, %v3085_v25  ;;  %v2114_v13 = vcombine.high %v2106_v4, %v2106_v4  ;;  %v2115_v3 = vcombine.high %v2113_v63, %v2113_v63 }
 0xa0a   :  { %v1980_v40 = vrot.slane %v1972_v36, %v3085_v25  ;;  %v1987_v41 = vrot.slane %v1973_v37, %v3085_v25  ;;  %v2148_v8 = vcombine.high %v2140_v1, %v2140_v1  ;;  %v2149_v7 = vcombine.high %v2147_v2, %v2147_v2 }
 0xa0b   :  { %v2005_v43 = vcombine.low %v1997_v38, %v2004_v39 }
 0xa0c   :  { %v1988_v44 = vcombine.low %v1980_v40, %v1987_v41 }
 0xa0d   :  { %v2011_v16 = vsel %vm277_vm0, %v2005_v43, 0.0 }
 0xa0e   :  { %2012 = vadd.xlane.f32.xlu0 %v2011_v16  ;;  %v2008_v21 = vsel %vm277_vm0, %v1988_v44, 0.0 }
 0xa0f   :  { %2009 = vadd.xlane.f32.xlu1 %v2008_v21 }
 0xa9b   :  { %v2013_v60 = vpop.xlane.xlu0 %2012 }
 0xa9c   :  { %v2015_v61 = vmul.f32 0.03125, %v2013_v60  ;;  %v2010_v15 = vpop.xlane.xlu1 %2009 }
 0xa9d   :  { %v2014_v17 = vmul.f32 0.03125, %v2010_v15 }
 0xa9e   :  { %v2017_v19 = vadd.f32 1e-05, %v2015_v61 }
 0xa9f   :  { %v2016_v22 = vadd.f32 1e-05, %v2014_v17 }
 0xaa0   :  { %2639 = vrsqrt.f32 %v2017_v19 }
 0xaa1   :  { %2641 = vrsqrt.f32 %v2016_v22 }
 0xaaa   :  { %v2640_v10 = vpop.eup %2639 }
 0xaab   :  { %v2642_v27 = vpop.eup %2641  ;;  %v2056_v29 = vrot.slane %v2640_v10, %v3375_v49  ;;  %v2063_v9 = vrot.slane %v2640_v10, %v3378_v53  ;;  %v2070_v51 = vrot.slane %v2640_v10, %v3381_v54  ;;  %v2077_v5 = vrot.slane %v2640_v10, %v3384_v56 }
 0xaac   :  { %v2028_v6 = vrot.slane %v2642_v27, %v3375_v49  ;;  %v2035_v30 = vrot.slane %v2642_v27, %v3378_v53  ;;  %v2042_v25 = vrot.slane %v2642_v27, %v3381_v54  ;;  %v2049_v31 = vrot.slane %v2642_v27, %v3384_v56 }
 0xaad   :  { %v2090_v52 = vmul.f32 %v2056_v29, %v3530_v11  ;;  %v2091_v33 = vmul.f32 %v2063_v9, %v3532_v12  ;;  %v2092_v55 = vmul.f32 %v2070_v51, %v3534_v28  ;;  %v2093_v34 = vmul.f32 %v2077_v5, %v3536_v32 }
 0xaae   :  { %v2086_v35 = vmul.f32 %v2028_v6, %v3538_v42  ;;  %v2087_v36 = vmul.f32 %v2035_v30, %v3540_v18  ;;  %v2088_v49 = vmul.f32 %v2042_v25, %v3542_v0  ;;  %v2089_v53 = vmul.f32 %v2049_v31, %v3544_v50 }
 0xaaf   :  { %v2124_v37 = vmul.f32 %v2106_v4, %v2090_v52  ;;  %v2125_v54 = vmul.f32 %v2114_v13, %v2091_v33  ;;  %v2126_v38 = vmul.f32 %v2113_v63, %v2092_v55  ;;  %v2127_v56 = vmul.f32 %v2115_v3, %v2093_v34 }
 0xab0   :  { %v2120_v11 = vmul.f32 %v2106_v4, %v2086_v35  ;;  %v2121_v12 = vmul.f32 %v2114_v13, %v2087_v36  ;;  %v2122_v39 = vmul.f32 %v2113_v63, %v2088_v49  ;;  %v2123_v28 = vmul.f32 %v2115_v3, %v2089_v53 }
 0xab1   :  { %v2158_v40 = vadd.f32 %v2140_v1, %v2124_v37  ;;  %v2159_v32 = vadd.f32 %v2148_v8, %v2125_v54  ;;  %v2160_v41 = vadd.f32 %v2147_v2, %v2126_v38  ;;  %v2161_v42 = vadd.f32 %v2149_v7, %v2127_v56 }
 0xab2   :  { %v2154_v43 = vadd.f32 %v2140_v1, %v2120_v11  ;;  %v2155_v18 = vadd.f32 %v2148_v8, %v2121_v12  ;;  %v2156_v44 = vadd.f32 %v2147_v2, %v2122_v39  ;;  %v2157_v0 = vadd.f32 %v2149_v7, %v2123_v28 }
 0xab3   :  { %2167 = vst.msk [vmem:[#allocation14 + $0xa] sm:$0x3] %vm205_vm6, %v2158_v40  ;;  %2168 = vst.msk [vmem:[#allocation14 + $0xc] sm:$0x3] %vm205_vm6, %v2159_v32 }
 0xab4   :  { %2169 = vst.msk [vmem:[#allocation14 + $0xe] sm:$0x3] %vm205_vm6, %v2160_v41  ;;  %2170 = vst.msk [vmem:[#allocation14 + $0x10] sm:$0x3] %vm205_vm6, %v2161_v42 }
 0xab5   :  { %2163 = vst.msk [vmem:[#allocation14 + $0x2] sm:$0x3] %vm205_vm6, %v2154_v43  ;;  %2164 = vst.msk [vmem:[#allocation14 + $0x4] sm:$0x3] %vm205_vm6, %v2155_v18 }
 0xab6   :  { %2165 = vst.msk [vmem:[#allocation14 + $0x6] sm:$0x3] %vm205_vm6, %v2156_v44  ;;  %2166 = vst.msk [vmem:[#allocation14 + $0x8] sm:$0x3] %vm205_vm6, %v2157_v0 }
 0xab7   :  { %2808 = shalt.err (!%p2805_p4)
}
 0xab8   :  { %s2809_s21 = scalar_lea.hbm %s3645_s19, 544 }
 0xab9   :  { %p2810_p5 = scmp.ne.s32.totalorder %s3645_s19, %s2809_s21  ;;  %p2813_p6 = scmp.lt.u32.totalorder %s2809_s21, %s3645_s19 }
 0xabb   :  { %p2815_p7 = pnand %p2813_p6, %p2810_p5 }
 0xabd   :  { %2818 = shalt.err (!%p2815_p7)
}
 0xabe   :  { %2182 = dma.vmem_to_hbm [thread:$0]  %s2177_s18, 544, %s3645_s19, [#allocation4], %s2833_s8, %s2833_s8, %s2834_s27  }
 0xabf   :  { %2827 = dma.done.wait [#allocation4], 544  }
 0xac0   :  { %2828 = vsyncadd [#allocation4], 4294966752 }
 0xac1   :  { %2186 = vsyncpa [#allocation3], 1 }
 0xac2   :  { %2187 = vsyncpa [#allocation6], 1 }
 0xac3   :  { %2188 = vsyncpa [#allocation9], 1 }
 0xac4   :  { %2189 = vsyncpa [#allocation12], 1 }
 0xac5   :  { %2190 = vsyncpa [#allocation4], 1 }

</bundles_post_ra>
